<compile_context>
chip_gen: v7x
topology: tpu7x:2x2x1
jax: 0.10.0
libtpu: 0.0.40
codegen_flags: <defaults>
</compile_context>

<pallas_src>
import functools
import math

import jax
import jax.numpy as jnp
from jax.experimental import pallas as pl
from jax.experimental.pallas import tpu as pltpu

_VMEM_LIMIT_BYTES = 32 * 1024 * 1024   # explicit; within scoped limits of v5e/v6e/v7x
_TILE_VMEM_BUDGET = 8 * 1024 * 1024    # budget for double-buffered tiles + weights


# ----------------------------------------------------------------------------
# helpers
# ----------------------------------------------------------------------------
def _round_up(x, m):
    return ((x + m - 1) // m) * m


def _row_align(dtype):
    # sublane packing: 8 rows for 32-bit dtypes, 16 for 16-bit, 32 for 8-bit
    return {4: 8, 2: 16, 1: 32}.get(jnp.dtype(dtype).itemsize, 8)


# ----------------------------------------------------------------------------
# Kernel 1: fused selective scan
#   inputs : delta (b,l,d_in), u (b,l,d_in), B (b,l,n), C (b,l,n),
#            A^T (n,d_in), D (1,d_in)
#   output : y (b,l,d_in)   with  y = scan(exp(delta*A), delta*B*u, C) + u*D
# ----------------------------------------------------------------------------
def _selective_scan_kernel(delta_ref, u_ref, b_ref, c_ref, a_ref, dpar_ref,
                           y_ref, state_ref, *, lc):
    # init state on the FIRST chunk of the (sequential) l axis; axis 0 is the
    # parallel channel axis, so key the init on program_id(1).
    @pl.when(pl.program_id(1) == 0)
    def _():
        state_ref[...] = jnp.zeros_like(state_ref)

    delta = delta_ref[...].astype(jnp.float32)      # (b, lc, dc)
    u = u_ref[...].astype(jnp.float32)              # (b, lc, dc)
    bb = b_ref[...].astype(jnp.float32)             # (b, lc, n)
    cc = c_ref[...].astype(jnp.float32)             # (b, lc, n)
    a = a_ref[...].astype(jnp.float32)              # (n, dc)
    dpar = dpar_ref[...].astype(jnp.float32)        # (1, dc)

    # Vectorized over the chunk: exp goes to the EUP slot, everything stays in
    # VMEM/vregs (never materialized in HBM).
    dA = jnp.exp(delta[:, :, None, :] * a[None, None, :, :])    # (b, lc, n, dc)
    dBu = (delta * u)[:, :, None, :] * bb[:, :, :, None]        # (b, lc, n, dc)

    st = state_ref[...]                                          # (b, n, dc)
    ys = []
    for t in range(lc):                                          # static unroll
        st = dA[:, t] * st + dBu[:, t]
        ys.append(jnp.sum(st * cc[:, t, :, None], axis=1))       # (b, dc)
    state_ref[...] = st

    y = jnp.stack(ys, axis=1) + u * dpar                         # (b, lc, dc)
    y_ref[...] = y.astype(y_ref.dtype)


def _choose_seq_chunk(l, b, n, dc, budget=4 * 1024 * 1024):
    # lc is a second-to-last block dim -> must be a multiple of 8 or == l.
    if l % 8 != 0:
        return l
    best = 8
    for lc in (64, 32, 16):
        if l % lc == 0 and 2 * b * lc * n * dc * 4 <= budget:
            best = max(best, lc)
    return best


def _choose_channel_block(d_in):
    # block d_in for v7x megacore sharding when it is large & lane-aligned
    if d_in > 128 and d_in % 128 == 0:
        return 128
    return d_in


def selective_scan_pallas(u, delta, A, B, C, D):
    """u, delta: (b,l,d_in); A: (d_in,n); B, C: (b,l,n); D: (d_in,) -> (b,l,d_in)."""
    b, l, d_in = u.shape
    n = A.shape[1]
    dc = _choose_channel_block(d_in)
    lc = _choose_seq_chunk(l, b, n, dc)

    a_t = jnp.transpose(A, (1, 0)).astype(jnp.float32)     # (n, d_in), tiny one-off
    d2 = D.reshape(1, d_in).astype(jnp.float32)

    grid = (d_in // dc, l // lc)                            # (parallel, sequential)

    cost = pl.CostEstimate(
        flops=10 * b * l * d_in * n + 2 * b * l * d_in,
        transcendentals=b * l * d_in * n,
        bytes_accessed=(3 * b * l * d_in + 2 * b * l * n + d_in * n + d_in) * 4,
    )

    y = pl.pallas_call(
        functools.partial(_selective_scan_kernel, lc=lc),
        out_shape=jax.ShapeDtypeStruct((b, l, d_in), u.dtype),
        grid_spec=pltpu.PrefetchScalarGridSpec(
            num_scalar_prefetch=0,
            grid=grid,
            in_specs=[
                pl.BlockSpec((b, lc, dc), lambda di, li: (0, li, di)),   # delta
                pl.BlockSpec((b, lc, dc), lambda di, li: (0, li, di)),   # u
                pl.BlockSpec((b, lc, n), lambda di, li: (0, li, 0)),     # B
                pl.BlockSpec((b, lc, n), lambda di, li: (0, li, 0)),     # C
                pl.BlockSpec((n, dc), lambda di, li: (0, di)),           # A^T
                pl.BlockSpec((1, dc), lambda di, li: (0, di)),           # D
            ],
            out_specs=pl.BlockSpec((b, lc, dc), lambda di, li: (0, li, di)),
            scratch_shapes=[pltpu.VMEM((b, n, dc), jnp.float32)],        # SSM state
        ),
        compiler_params=pltpu.CompilerParams(
            dimension_semantics=("parallel", "arbitrary"),
            vmem_limit_bytes=_VMEM_LIMIT_BYTES,
        ),
        cost_estimate=cost,
    )(delta, u, B, C, a_t, d2)
    return y


def selective_scan_ref(u, delta, A, B, C, D):
    b, l, d_in = u.shape
    n = A.shape[1]
    deltaA = jnp.exp(jnp.einsum("bld,dn->bldn", delta, A))
    deltaB_u = jnp.einsum("bld,bln,bld->bldn", delta, B, u)

    def step(st, inp):
        dA_i, dBu_i, c_i = inp
        st = dA_i * st + dBu_i
        y = jnp.einsum("bdn,bn->bd", st, c_i)
        return st, y

    st0 = jnp.zeros((b, d_in, n), jnp.float32)
    _, ys = jax.lax.scan(
        step, st0,
        (jnp.moveaxis(deltaA, 1, 0), jnp.moveaxis(deltaB_u, 1, 0), jnp.moveaxis(C, 1, 0)),
    )
    return jnp.moveaxis(ys, 0, 1) + u * D


# ----------------------------------------------------------------------------
# Kernel 2: fused RMSNorm + matmul (norm folded into the in-projection)
# ----------------------------------------------------------------------------
def _rmsnorm_matmul_kernel(x_ref, w_ref, wm_ref, o_ref, *, eps):
    x = x_ref[...].astype(jnp.float32)                       # (bm, d_model)
    ms = jnp.mean(x * x, axis=-1, keepdims=True)
    inv = jax.lax.rsqrt(ms + eps)
    # cast the normalized activations back to the weight dtype; the resident
    # weight tile is fed to the MXU in its native dtype (bf16 stays bf16)
    xn = (x * inv * w_ref[...].astype(jnp.float32)).astype(wm_ref.dtype)
    o_ref[...] = jnp.dot(xn, wm_ref[...],
                         preferred_element_type=jnp.float32).astype(o_ref.dtype)


def _inproj_pallas_ok(d_model, d_out, dtype):
    """Only use the fused Pallas in-projection at MXU-friendly shapes."""
    if d_model % 128 != 0 or d_out % 128 != 0:
        return False
    # weight is double-buffered by the pipeline; it must fit the VMEM budget
    return 2 * d_model * d_out * jnp.dtype(dtype).itemsize <= _TILE_VMEM_BUDGET


def rmsnorm_matmul(x, norm_w, w_mat, eps=1e-5, max_block_rows=512):
    """Computes RMSNorm(x) @ w_mat. x: (..., d_model); w_mat: (d_model, d_out)."""
    orig_lead = x.shape[:-1]
    d_model = x.shape[-1]
    d_out = w_mat.shape[1]
    rows = math.prod(orig_lead) if orig_lead else 1
    x2d = x.reshape(rows, d_model)

    itemsize = jnp.dtype(x.dtype).itemsize
    align = _row_align(x.dtype)
    # VMEM accounting: double-buffered x / out tiles, double-buffered (invariant)
    # weight block, plus in-kernel f32 temporaries (x, xn).
    w_bytes = 2 * d_model * d_out * jnp.dtype(w_mat.dtype).itemsize
    per_row = (d_model + d_out) * itemsize * 2 + (d_model + d_out) * 4
    bm = max_block_rows
    while bm > align and bm * per_row + w_bytes > _TILE_VMEM_BUDGET:
        bm //= 2
    bm = max(bm, align)
    # keep the row grid at >= 2 steps when rows allow (v7x has 2 TensorCores)
    if rows > align:
        bm = min(bm, _round_up(max(rows // 2, align), align))
    bm = min(bm, _round_up(rows, align))
    grid = (pl.cdiv(rows, bm),)          # no explicit pad/slice: edge block reads
                                         # are padded, edge writes are masked

    cost = pl.CostEstimate(
        flops=2 * rows * d_model * d_out + 5 * rows * d_model,
        transcendentals=rows,
        bytes_accessed=(rows * d_model + rows * d_out) * itemsize
                       + d_model * d_out * jnp.dtype(w_mat.dtype).itemsize,
    )
    out = pl.pallas_call(
        functools.partial(_rmsnorm_matmul_kernel, eps=eps),
        out_shape=jax.ShapeDtypeStruct((rows, d_out), x.dtype),
        grid_spec=pltpu.PrefetchScalarGridSpec(
            num_scalar_prefetch=0,
            grid=grid,
            in_specs=[
                pl.BlockSpec((bm, d_model), lambda i: (i, 0)),
                pl.BlockSpec((1, d_model), lambda i: (0, 0)),
                pl.BlockSpec((d_model, d_out), lambda i: (0, 0)),
            ],
            out_specs=pl.BlockSpec((bm, d_out), lambda i: (i, 0)),
        ),
        compiler_params=pltpu.CompilerParams(
            dimension_semantics=("parallel",),
            vmem_limit_bytes=_VMEM_LIMIT_BYTES,
        ),
        cost_estimate=cost,
    )(x2d, norm_w.reshape(1, d_model), w_mat)
    return out.reshape(*orig_lead, d_out)


def rmsnorm_ref(x, weight, eps=1e-5):
    xf = x.astype(jnp.float32)
    ms = jnp.mean(xf * xf, axis=-1, keepdims=True)
    return (xf * jax.lax.rsqrt(ms + eps) * weight.astype(jnp.float32)).astype(x.dtype)


# ----------------------------------------------------------------------------
# Model glue (pure JAX around the Pallas kernels)
# ----------------------------------------------------------------------------
def posemb_sincos_1d(n, d_model, temperature=10000.0, dtype=jnp.float32):
    omega = jnp.arange(d_model // 2, dtype=jnp.float32) / (d_model // 2 - 1)
    omega = 1.0 / (temperature ** omega)
    pos = jnp.arange(n, dtype=jnp.float32)[:, None] * omega[None, :]
    return jnp.concatenate([jnp.sin(pos), jnp.cos(pos)], axis=1).astype(dtype)


def causal_depthwise_conv1d(x, w):
    # x: (b, l, d_inner); w: (d_inner, d_conv); causal (left-padded), no bias
    b, l, d = x.shape
    k = w.shape[-1]
    xp = jnp.pad(x, ((0, 0), (k - 1, 0), (0, 0)))
    out = jnp.zeros_like(x)
    for i in range(k):
        out = out + xp[:, i:i + l, :] * w[:, i]
    return out


def ssm(lp, x, cfg, use_pallas):
    d_state, dt_rank = cfg["d_state"], cfg["dt_rank"]
    A = -jnp.exp(lp["A_log"].astype(jnp.float32))                    # (d_in, n)
    D = lp["D"].astype(jnp.float32)
    x_dbl = x @ lp["x_proj_w"]                                       # (b, l, dt_rank + 2n)
    delta, B, C = jnp.split(x_dbl, [dt_rank, dt_rank + d_state], axis=-1)
    delta = jax.nn.softplus(delta @ lp["dt_proj_w"] + lp["dt_proj_b"])   # (b, l, d_in)

    # deltaA / deltaB_u are computed inside the Pallas kernel (never in HBM).
    if use_pallas:
        return selective_scan_pallas(x, delta, A, B, C, D)
    return selective_scan_ref(x, delta, A, B, C, D)


def mamba_block(lp, x, cfg, use_pallas):
    d_inner, d_model = cfg["d_inner"], cfg["d_model"]
    if use_pallas and _inproj_pallas_ok(d_model, 2 * d_inner, x.dtype):
        # fused RMSNorm + in_proj (one HBM round trip of the activation saved)
        x_and_res = rmsnorm_matmul(x, lp["norm_w"], lp["in_proj_w"], eps=1e-5)
    else:
        # shape-gated: at small d_model the MXU would be mostly idle; XLA is fine.
        x_and_res = rmsnorm_ref(x, lp["norm_w"], 1e-5) @ lp["in_proj_w"]
    xs, res = jnp.split(x_and_res, [d_inner], axis=-1)
    xs = causal_depthwise_conv1d(xs, lp["conv_w"])
    xs = jax.nn.silu(xs)
    y = ssm(lp, xs, cfg, use_pallas)
    y = y * jax.nn.silu(res)
    return y @ lp["out_proj_w"]


def forward(params, x, cfg, use_pallas=True):
    b = x.shape[0]
    n_patches, patch_size, d_model = cfg["n_patches"], cfg["patch_size"], cfg["d_model"]

    # FFT branch (torch.view_as_real(fft(x)))
    freqs = jnp.fft.fft(x)
    freqs = jnp.stack([freqs.real, freqs.imag], axis=-1)             # (b, n_inputs, 2)

    xe = x.reshape(b, n_patches, patch_size) @ params["patch_w"] + params["patch_b"]
    fe = freqs.reshape(b, n_patches, patch_size * 2) @ params["freq_w"] + params["freq_b"]

    pe = posemb_sincos_1d(n_patches, d_model, dtype=x.dtype)
    xe = xe + pe
    fe = fe + pe
    h = jnp.concatenate([xe, fe], axis=1)                            # (b, 2*n_patches, d_model)

    for lp in params["layers"]:
        h = mamba_block(lp, h, cfg, use_pallas) + h                  # ResidualBlock

    # norm_f is Identity for layer_norm=False (default)
    h = h.mean(axis=1)
    out = h @ params["head_w"] + params["head_b"]
    return jnp.squeeze(out)


# ----------------------------------------------------------------------------
# deterministic parameter init (PyTorch-style uniform bounds)
# ----------------------------------------------------------------------------
def _linear_init(key, fan_in, fan_out, bias=True):
    k1, k2 = jax.random.split(key)
    bound = 1.0 / math.sqrt(fan_in)
    w = jax.random.uniform(k1, (fan_in, fan_out), jnp.float32, -bound, bound)
    b = jax.random.uniform(k2, (fan_out,), jnp.float32, -bound, bound) if bias else None
    return w, b


def init_params(key, cfg):
    d_model, d_inner = cfg["d_model"], cfg["d_inner"]
    d_state, dt_rank, d_conv = cfg["d_state"], cfg["dt_rank"], cfg["d_conv"]
    patch_size, n_outputs = cfg["patch_size"], cfg["n_outputs"]

    keys = jax.random.split(key, 3 + cfg["n_layers"])
    params = {}
    params["patch_w"], params["patch_b"] = _linear_init(keys[0], patch_size, d_model)
    params["freq_w"], params["freq_b"] = _linear_init(keys[1], patch_size * 2, d_model)
    params["head_w"], params["head_b"] = _linear_init(keys[2], d_model, n_outputs)

    layers = []
    for li in range(cfg["n_layers"]):
        ks = jax.random.split(keys[3 + li], 5)
        lp = {}
        lp["norm_w"] = jnp.ones((d_model,), jnp.float32)
        lp["in_proj_w"], _ = _linear_init(ks[0], d_model, 2 * d_inner, bias=False)
        lp["conv_w"] = jax.random.uniform(ks[1], (d_inner, d_conv), jnp.float32, -0.5, 0.5)
        lp["x_proj_w"], _ = _linear_init(ks[2], d_inner, dt_rank + 2 * d_state, bias=False)
        lp["dt_proj_w"], lp["dt_proj_b"] = _linear_init(ks[3], dt_rank, d_inner, bias=True)
        A = jnp.tile(jnp.arange(1, d_state + 1, dtype=jnp.float32)[None, :], (d_inner, 1))
        lp["A_log"] = jnp.log(A)
        lp["D"] = jnp.ones((d_inner,), jnp.float32)
        lp["out_proj_w"], _ = _linear_init(ks[4], d_inner, d_model, bias=False)
        layers.append(lp)
    params["layers"] = layers
    return params


# ----------------------------------------------------------------------------
if __name__ == "__main__":
    cfg = dict(n_inputs=64, n_outputs=1, n_patches=8, d_model=32,
               d_state=4, d_conv=4, expand=2, n_layers=2)
    cfg["patch_size"] = cfg["n_inputs"] // cfg["n_patches"]     # 8
    cfg["d_inner"] = cfg["d_model"] * cfg["expand"]             # 64
    cfg["dt_rank"] = math.ceil(cfg["d_model"] / 16)             # 2

    key = jax.random.PRNGKey(0)
    k_params, k_x, k_a, k_b, k_c = jax.random.split(key, 5)
    params = init_params(k_params, cfg)
    x = jax.random.normal(k_x, (2, cfg["n_inputs"]), dtype=jnp.float32)

    fwd_pallas = jax.jit(lambda p, inp: forward(p, inp, cfg, use_pallas=True))
    fwd_ref = jax.jit(lambda p, inp: forward(p, inp, cfg, use_pallas=False))

    out = fwd_pallas(params, x)
    jax.block_until_ready(out)
    ref = fwd_ref(params, x)
    jax.block_until_ready(ref)

    assert out.shape == (2,), out.shape
    assert jnp.allclose(out, ref, atol=1e-3, rtol=1e-3), (out, ref)

    # exercise the fused RMSNorm + matmul kernel at MXU-friendly shapes
    # (non-divisible row count -> cdiv grid with masked edge block)
    xs = jax.random.normal(k_a, (3, 50, 128), dtype=jnp.float32)
    wn = 1.0 + 0.1 * jax.random.normal(k_b, (128,), dtype=jnp.float32)
    wm = 0.05 * jax.random.normal(k_c, (128, 256), dtype=jnp.float32)
    fused = rmsnorm_matmul(xs, wn, wm, eps=1e-5)
    jax.block_until_ready(fused)
    fused_ref = rmsnorm_ref(xs, wn, 1e-5) @ wm
    assert fused.shape == fused_ref.shape
    assert jnp.allclose(fused, fused_ref, atol=2e-2, rtol=2e-2), "rmsnorm_matmul mismatch"

    print("KERNEL_OK")
</pallas_src>

<mosaic_0001>
module attributes {stable_mosaic.version = 11 : i64} {
  func.func @_selective_scan_kernel(%arg0: i32, %arg1: i32, %arg2: memref<2x16x64xf32, #tpu.memory_space<vmem>>, %arg3: memref<2x16x64xf32, #tpu.memory_space<vmem>>, %arg4: memref<2x16x4xf32, #tpu.memory_space<vmem>>, %arg5: memref<2x16x4xf32, #tpu.memory_space<vmem>>, %arg6: memref<4x64xf32, #tpu.memory_space<vmem>>, %arg7: memref<1x64xf32, #tpu.memory_space<vmem>>, %arg8: memref<2x16x64xf32, #tpu.memory_space<vmem>>, %arg9: memref<2x4x64xf32, #tpu.memory_space<vmem>>) attributes {dimension_semantics = [#tpu.dimension_semantics<parallel>, #tpu.dimension_semantics<arbitrary>], iteration_bounds = array<i64: 1, 1>, scalar_prefetch = 0 : i64, scratch_operands = 1 : i64, tpu.core_type = #tpu.core_type<tc>, window_params = [{transform_indices = @transform_0, window_bounds = array<i64: 2, 16, 64>}, {transform_indices = @transform_1, window_bounds = array<i64: 2, 16, 64>}, {transform_indices = @transform_2, window_bounds = array<i64: 2, 16, 4>}, {transform_indices = @transform_3, window_bounds = array<i64: 2, 16, 4>}, {transform_indices = @transform_4, window_bounds = array<i64: 4, 64>}, {transform_indices = @transform_5, window_bounds = array<i64: 1, 64>}, {transform_indices = @transform_6, window_bounds = array<i64: 2, 16, 64>}]} {
    %c0_i32 = arith.constant 0 : i32
    %0 = arith.cmpi eq, %arg1, %c0_i32 : i32
    %1 = arith.extui %0 : i1 to i32
    %c0_i32_0 = arith.constant 0 : i32
    %2 = arith.cmpi ne, %1, %c0_i32_0 : i32
    scf.if %2 {
      %cst_40 = arith.constant 0.000000e+00 : f32
      %237 = vector.broadcast %cst_40 : f32 to vector<2x4x64xf32>
      %c0_41 = arith.constant 0 : index
      %c0_42 = arith.constant 0 : index
      %c0_43 = arith.constant 0 : index
      %238 = vector.load %arg9[%c0_41, %c0_42, %c0_43] : memref<2x4x64xf32, #tpu.memory_space<vmem>>, vector<2x4x64xf32>
      tpu.vector_store %arg9[%c0_41, %c0_42, %c0_43], %237 {strides = array<i32>} : memref<2x4x64xf32, #tpu.memory_space<vmem>>, vector<2x4x64xf32>,
    } else {
    }
    %c0 = arith.constant 0 : index
    %c0_1 = arith.constant 0 : index
    %c0_2 = arith.constant 0 : index
    %3 = vector.load %arg2[%c0, %c0_1, %c0_2] : memref<2x16x64xf32, #tpu.memory_space<vmem>>, vector<2x16x64xf32>
    %c0_3 = arith.constant 0 : index
    %c0_4 = arith.constant 0 : index
    %c0_5 = arith.constant 0 : index
    %4 = vector.load %arg3[%c0_3, %c0_4, %c0_5] : memref<2x16x64xf32, #tpu.memory_space<vmem>>, vector<2x16x64xf32>
    %c0_6 = arith.constant 0 : index
    %c0_7 = arith.constant 0 : index
    %c0_8 = arith.constant 0 : index
    %5 = vector.load %arg4[%c0_6, %c0_7, %c0_8] : memref<2x16x4xf32, #tpu.memory_space<vmem>>, vector<2x16x4xf32>
    %c0_9 = arith.constant 0 : index
    %c0_10 = arith.constant 0 : index
    %c0_11 = arith.constant 0 : index
    %6 = vector.load %arg5[%c0_9, %c0_10, %c0_11] : memref<2x16x4xf32, #tpu.memory_space<vmem>>, vector<2x16x4xf32>
    %c0_12 = arith.constant 0 : index
    %c0_13 = arith.constant 0 : index
    %7 = vector.load %arg6[%c0_12, %c0_13] : memref<4x64xf32, #tpu.memory_space<vmem>>, vector<4x64xf32>
    %c0_14 = arith.constant 0 : index
    %c0_15 = arith.constant 0 : index
    %8 = vector.load %arg7[%c0_14, %c0_15] : memref<1x64xf32, #tpu.memory_space<vmem>>, vector<1x64xf32>
    %9 = vector.shape_cast %3 : vector<2x16x64xf32> to vector<2x16x1x64xf32>
    %10 = vector.shape_cast %7 : vector<4x64xf32> to vector<1x1x4x64xf32>
    %11 = vector.broadcast %9 : vector<2x16x1x64xf32> to vector<2x16x4x64xf32>
    %12 = vector.broadcast %10 : vector<1x1x4x64xf32> to vector<2x16x4x64xf32>
    %13 = arith.mulf %11, %12 : vector<2x16x4x64xf32>
    %14 = math.exp %13 : vector<2x16x4x64xf32>
    %15 = arith.mulf %3, %4 : vector<2x16x64xf32>
    %16 = vector.shape_cast %15 : vector<2x16x64xf32> to vector<2x16x1x64xf32>
    %17 = vector.shape_cast %5 : vector<2x16x4xf32> to vector<2x16x4x1xf32>
    %18 = vector.broadcast %16 : vector<2x16x1x64xf32> to vector<2x16x4x64xf32>
    %19 = vector.broadcast %17 : vector<2x16x4x1xf32> to vector<2x16x4x64xf32>
    %20 = arith.mulf %18, %19 : vector<2x16x4x64xf32>
    %c0_16 = arith.constant 0 : index
    %c0_17 = arith.constant 0 : index
    %c0_18 = arith.constant 0 : index
    %21 = vector.load %arg9[%c0_16, %c0_17, %c0_18] : memref<2x4x64xf32, #tpu.memory_space<vmem>>, vector<2x4x64xf32>
    %22 = vector.extract_strided_slice %14 {offsets = [0, 0, 0, 0], sizes = [2, 1, 4, 64], strides = [1, 1, 1, 1]} : vector<2x16x4x64xf32> to vector<2x1x4x64xf32>
    %23 = vector.shape_cast %22 : vector<2x1x4x64xf32> to vector<2x4x64xf32>
    %24 = arith.mulf %23, %21 : vector<2x4x64xf32>
    %25 = vector.extract_strided_slice %20 {offsets = [0, 0, 0, 0], sizes = [2, 1, 4, 64], strides = [1, 1, 1, 1]} : vector<2x16x4x64xf32> to vector<2x1x4x64xf32>
    %26 = vector.shape_cast %25 : vector<2x1x4x64xf32> to vector<2x4x64xf32>
    %27 = arith.addf %24, %26 : vector<2x4x64xf32>
    %28 = vector.extract_strided_slice %6 {offsets = [0, 0, 0], sizes = [2, 1, 4], strides = [1, 1, 1]} : vector<2x16x4xf32> to vector<2x1x4xf32>
    %29 = vector.shape_cast %28 : vector<2x1x4xf32> to vector<2x4xf32>
    %30 = vector.shape_cast %29 : vector<2x4xf32> to vector<2x4x1xf32>
    %31 = vector.broadcast %30 : vector<2x4x1xf32> to vector<2x4x64xf32>
    %32 = arith.mulf %27, %31 : vector<2x4x64xf32>
    %cst = arith.constant dense<0.000000e+00> : vector<2x64xf32>
    %33 = vector.multi_reduction <add>, %32, %cst [1] : vector<2x4x64xf32> to vector<2x64xf32>
    %34 = vector.extract_strided_slice %14 {offsets = [0, 1, 0, 0], sizes = [2, 1, 4, 64], strides = [1, 1, 1, 1]} : vector<2x16x4x64xf32> to vector<2x1x4x64xf32>
    %35 = vector.shape_cast %34 : vector<2x1x4x64xf32> to vector<2x4x64xf32>
    %36 = arith.mulf %35, %27 : vector<2x4x64xf32>
    %37 = vector.extract_strided_slice %20 {offsets = [0, 1, 0, 0], sizes = [2, 1, 4, 64], strides = [1, 1, 1, 1]} : vector<2x16x4x64xf32> to vector<2x1x4x64xf32>
    %38 = vector.shape_cast %37 : vector<2x1x4x64xf32> to vector<2x4x64xf32>
    %39 = arith.addf %36, %38 : vector<2x4x64xf32>
    %40 = vector.extract_strided_slice %6 {offsets = [0, 1, 0], sizes = [2, 1, 4], strides = [1, 1, 1]} : vector<2x16x4xf32> to vector<2x1x4xf32>
    %41 = vector.shape_cast %40 : vector<2x1x4xf32> to vector<2x4xf32>
    %42 = vector.shape_cast %41 : vector<2x4xf32> to vector<2x4x1xf32>
    %43 = vector.broadcast %42 : vector<2x4x1xf32> to vector<2x4x64xf32>
    %44 = arith.mulf %39, %43 : vector<2x4x64xf32>
    %cst_19 = arith.constant dense<0.000000e+00> : vector<2x64xf32>
    %45 = vector.multi_reduction <add>, %44, %cst_19 [1] : vector<2x4x64xf32> to vector<2x64xf32>
    %46 = vector.extract_strided_slice %14 {offsets = [0, 2, 0, 0], sizes = [2, 1, 4, 64], strides = [1, 1, 1, 1]} : vector<2x16x4x64xf32> to vector<2x1x4x64xf32>
    %47 = vector.shape_cast %46 : vector<2x1x4x64xf32> to vector<2x4x64xf32>
    %48 = arith.mulf %47, %39 : vector<2x4x64xf32>
    %49 = vector.extract_strided_slice %20 {offsets = [0, 2, 0, 0], sizes = [2, 1, 4, 64], strides = [1, 1, 1, 1]} : vector<2x16x4x64xf32> to vector<2x1x4x64xf32>
    %50 = vector.shape_cast %49 : vector<2x1x4x64xf32> to vector<2x4x64xf32>
    %51 = arith.addf %48, %50 : vector<2x4x64xf32>
    %52 = vector.extract_strided_slice %6 {offsets = [0, 2, 0], sizes = [2, 1, 4], strides = [1, 1, 1]} : vector<2x16x4xf32> to vector<2x1x4xf32>
    %53 = vector.shape_cast %52 : vector<2x1x4xf32> to vector<2x4xf32>
    %54 = vector.shape_cast %53 : vector<2x4xf32> to vector<2x4x1xf32>
    %55 = vector.broadcast %54 : vector<2x4x1xf32> to vector<2x4x64xf32>
    %56 = arith.mulf %51, %55 : vector<2x4x64xf32>
    %cst_20 = arith.constant dense<0.000000e+00> : vector<2x64xf32>
    %57 = vector.multi_reduction <add>, %56, %cst_20 [1] : vector<2x4x64xf32> to vector<2x64xf32>
    %58 = vector.extract_strided_slice %14 {offsets = [0, 3, 0, 0], sizes = [2, 1, 4, 64], strides = [1, 1, 1, 1]} : vector<2x16x4x64xf32> to vector<2x1x4x64xf32>
    %59 = vector.shape_cast %58 : vector<2x1x4x64xf32> to vector<2x4x64xf32>
    %60 = arith.mulf %59, %51 : vector<2x4x64xf32>
    %61 = vector.extract_strided_slice %20 {offsets = [0, 3, 0, 0], sizes = [2, 1, 4, 64], strides = [1, 1, 1, 1]} : vector<2x16x4x64xf32> to vector<2x1x4x64xf32>
    %62 = vector.shape_cast %61 : vector<2x1x4x64xf32> to vector<2x4x64xf32>
    %63 = arith.addf %60, %62 : vector<2x4x64xf32>
    %64 = vector.extract_strided_slice %6 {offsets = [0, 3, 0], sizes = [2, 1, 4], strides = [1, 1, 1]} : vector<2x16x4xf32> to vector<2x1x4xf32>
    %65 = vector.shape_cast %64 : vector<2x1x4xf32> to vector<2x4xf32>
    %66 = vector.shape_cast %65 : vector<2x4xf32> to vector<2x4x1xf32>
    %67 = vector.broadcast %66 : vector<2x4x1xf32> to vector<2x4x64xf32>
    %68 = arith.mulf %63, %67 : vector<2x4x64xf32>
    %cst_21 = arith.constant dense<0.000000e+00> : vector<2x64xf32>
    %69 = vector.multi_reduction <add>, %68, %cst_21 [1] : vector<2x4x64xf32> to vector<2x64xf32>
    %70 = vector.extract_strided_slice %14 {offsets = [0, 4, 0, 0], sizes = [2, 1, 4, 64], strides = [1, 1, 1, 1]} : vector<2x16x4x64xf32> to vector<2x1x4x64xf32>
    %71 = vector.shape_cast %70 : vector<2x1x4x64xf32> to vector<2x4x64xf32>
    %72 = arith.mulf %71, %63 : vector<2x4x64xf32>
    %73 = vector.extract_strided_slice %20 {offsets = [0, 4, 0, 0], sizes = [2, 1, 4, 64], strides = [1, 1, 1, 1]} : vector<2x16x4x64xf32> to vector<2x1x4x64xf32>
    %74 = vector.shape_cast %73 : vector<2x1x4x64xf32> to vector<2x4x64xf32>
    %75 = arith.addf %72, %74 : vector<2x4x64xf32>
    %76 = vector.extract_strided_slice %6 {offsets = [0, 4, 0], sizes = [2, 1, 4], strides = [1, 1, 1]} : vector<2x16x4xf32> to vector<2x1x4xf32>
    %77 = vector.shape_cast %76 : vector<2x1x4xf32> to vector<2x4xf32>
    %78 = vector.shape_cast %77 : vector<2x4xf32> to vector<2x4x1xf32>
    %79 = vector.broadcast %78 : vector<2x4x1xf32> to vector<2x4x64xf32>
    %80 = arith.mulf %75, %79 : vector<2x4x64xf32>
    %cst_22 = arith.constant dense<0.000000e+00> : vector<2x64xf32>
    %81 = vector.multi_reduction <add>, %80, %cst_22 [1] : vector<2x4x64xf32> to vector<2x64xf32>
    %82 = vector.extract_strided_slice %14 {offsets = [0, 5, 0, 0], sizes = [2, 1, 4, 64], strides = [1, 1, 1, 1]} : vector<2x16x4x64xf32> to vector<2x1x4x64xf32>
    %83 = vector.shape_cast %82 : vector<2x1x4x64xf32> to vector<2x4x64xf32>
    %84 = arith.mulf %83, %75 : vector<2x4x64xf32>
    %85 = vector.extract_strided_slice %20 {offsets = [0, 5, 0, 0], sizes = [2, 1, 4, 64], strides = [1, 1, 1, 1]} : vector<2x16x4x64xf32> to vector<2x1x4x64xf32>
    %86 = vector.shape_cast %85 : vector<2x1x4x64xf32> to vector<2x4x64xf32>
    %87 = arith.addf %84, %86 : vector<2x4x64xf32>
    %88 = vector.extract_strided_slice %6 {offsets = [0, 5, 0], sizes = [2, 1, 4], strides = [1, 1, 1]} : vector<2x16x4xf32> to vector<2x1x4xf32>
    %89 = vector.shape_cast %88 : vector<2x1x4xf32> to vector<2x4xf32>
    %90 = vector.shape_cast %89 : vector<2x4xf32> to vector<2x4x1xf32>
    %91 = vector.broadcast %90 : vector<2x4x1xf32> to vector<2x4x64xf32>
    %92 = arith.mulf %87, %91 : vector<2x4x64xf32>
    %cst_23 = arith.constant dense<0.000000e+00> : vector<2x64xf32>
    %93 = vector.multi_reduction <add>, %92, %cst_23 [1] : vector<2x4x64xf32> to vector<2x64xf32>
    %94 = vector.extract_strided_slice %14 {offsets = [0, 6, 0, 0], sizes = [2, 1, 4, 64], strides = [1, 1, 1, 1]} : vector<2x16x4x64xf32> to vector<2x1x4x64xf32>
    %95 = vector.shape_cast %94 : vector<2x1x4x64xf32> to vector<2x4x64xf32>
    %96 = arith.mulf %95, %87 : vector<2x4x64xf32>
    %97 = vector.extract_strided_slice %20 {offsets = [0, 6, 0, 0], sizes = [2, 1, 4, 64], strides = [1, 1, 1, 1]} : vector<2x16x4x64xf32> to vector<2x1x4x64xf32>
    %98 = vector.shape_cast %97 : vector<2x1x4x64xf32> to vector<2x4x64xf32>
    %99 = arith.addf %96, %98 : vector<2x4x64xf32>
    %100 = vector.extract_strided_slice %6 {offsets = [0, 6, 0], sizes = [2, 1, 4], strides = [1, 1, 1]} : vector<2x16x4xf32> to vector<2x1x4xf32>
    %101 = vector.shape_cast %100 : vector<2x1x4xf32> to vector<2x4xf32>
    %102 = vector.shape_cast %101 : vector<2x4xf32> to vector<2x4x1xf32>
    %103 = vector.broadcast %102 : vector<2x4x1xf32> to vector<2x4x64xf32>
    %104 = arith.mulf %99, %103 : vector<2x4x64xf32>
    %cst_24 = arith.constant dense<0.000000e+00> : vector<2x64xf32>
    %105 = vector.multi_reduction <add>, %104, %cst_24 [1] : vector<2x4x64xf32> to vector<2x64xf32>
    %106 = vector.extract_strided_slice %14 {offsets = [0, 7, 0, 0], sizes = [2, 1, 4, 64], strides = [1, 1, 1, 1]} : vector<2x16x4x64xf32> to vector<2x1x4x64xf32>
    %107 = vector.shape_cast %106 : vector<2x1x4x64xf32> to vector<2x4x64xf32>
    %108 = arith.mulf %107, %99 : vector<2x4x64xf32>
    %109 = vector.extract_strided_slice %20 {offsets = [0, 7, 0, 0], sizes = [2, 1, 4, 64], strides = [1, 1, 1, 1]} : vector<2x16x4x64xf32> to vector<2x1x4x64xf32>
    %110 = vector.shape_cast %109 : vector<2x1x4x64xf32> to vector<2x4x64xf32>
    %111 = arith.addf %108, %110 : vector<2x4x64xf32>
    %112 = vector.extract_strided_slice %6 {offsets = [0, 7, 0], sizes = [2, 1, 4], strides = [1, 1, 1]} : vector<2x16x4xf32> to vector<2x1x4xf32>
    %113 = vector.shape_cast %112 : vector<2x1x4xf32> to vector<2x4xf32>
    %114 = vector.shape_cast %113 : vector<2x4xf32> to vector<2x4x1xf32>
    %115 = vector.broadcast %114 : vector<2x4x1xf32> to vector<2x4x64xf32>
    %116 = arith.mulf %111, %115 : vector<2x4x64xf32>
    %cst_25 = arith.constant dense<0.000000e+00> : vector<2x64xf32>
    %117 = vector.multi_reduction <add>, %116, %cst_25 [1] : vector<2x4x64xf32> to vector<2x64xf32>
    %118 = vector.extract_strided_slice %14 {offsets = [0, 8, 0, 0], sizes = [2, 1, 4, 64], strides = [1, 1, 1, 1]} : vector<2x16x4x64xf32> to vector<2x1x4x64xf32>
    %119 = vector.shape_cast %118 : vector<2x1x4x64xf32> to vector<2x4x64xf32>
    %120 = arith.mulf %119, %111 : vector<2x4x64xf32>
    %121 = vector.extract_strided_slice %20 {offsets = [0, 8, 0, 0], sizes = [2, 1, 4, 64], strides = [1, 1, 1, 1]} : vector<2x16x4x64xf32> to vector<2x1x4x64xf32>
    %122 = vector.shape_cast %121 : vector<2x1x4x64xf32> to vector<2x4x64xf32>
    %123 = arith.addf %120, %122 : vector<2x4x64xf32>
    %124 = vector.extract_strided_slice %6 {offsets = [0, 8, 0], sizes = [2, 1, 4], strides = [1, 1, 1]} : vector<2x16x4xf32> to vector<2x1x4xf32>
    %125 = vector.shape_cast %124 : vector<2x1x4xf32> to vector<2x4xf32>
    %126 = vector.shape_cast %125 : vector<2x4xf32> to vector<2x4x1xf32>
    %127 = vector.broadcast %126 : vector<2x4x1xf32> to vector<2x4x64xf32>
    %128 = arith.mulf %123, %127 : vector<2x4x64xf32>
    %cst_26 = arith.constant dense<0.000000e+00> : vector<2x64xf32>
    %129 = vector.multi_reduction <add>, %128, %cst_26 [1] : vector<2x4x64xf32> to vector<2x64xf32>
    %130 = vector.extract_strided_slice %14 {offsets = [0, 9, 0, 0], sizes = [2, 1, 4, 64], strides = [1, 1, 1, 1]} : vector<2x16x4x64xf32> to vector<2x1x4x64xf32>
    %131 = vector.shape_cast %130 : vector<2x1x4x64xf32> to vector<2x4x64xf32>
    %132 = arith.mulf %131, %123 : vector<2x4x64xf32>
    %133 = vector.extract_strided_slice %20 {offsets = [0, 9, 0, 0], sizes = [2, 1, 4, 64], strides = [1, 1, 1, 1]} : vector<2x16x4x64xf32> to vector<2x1x4x64xf32>
    %134 = vector.shape_cast %133 : vector<2x1x4x64xf32> to vector<2x4x64xf32>
    %135 = arith.addf %132, %134 : vector<2x4x64xf32>
    %136 = vector.extract_strided_slice %6 {offsets = [0, 9, 0], sizes = [2, 1, 4], strides = [1, 1, 1]} : vector<2x16x4xf32> to vector<2x1x4xf32>
    %137 = vector.shape_cast %136 : vector<2x1x4xf32> to vector<2x4xf32>
    %138 = vector.shape_cast %137 : vector<2x4xf32> to vector<2x4x1xf32>
    %139 = vector.broadcast %138 : vector<2x4x1xf32> to vector<2x4x64xf32>
    %140 = arith.mulf %135, %139 : vector<2x4x64xf32>
    %cst_27 = arith.constant dense<0.000000e+00> : vector<2x64xf32>
    %141 = vector.multi_reduction <add>, %140, %cst_27 [1] : vector<2x4x64xf32> to vector<2x64xf32>
    %142 = vector.extract_strided_slice %14 {offsets = [0, 10, 0, 0], sizes = [2, 1, 4, 64], strides = [1, 1, 1, 1]} : vector<2x16x4x64xf32> to vector<2x1x4x64xf32>
    %143 = vector.shape_cast %142 : vector<2x1x4x64xf32> to vector<2x4x64xf32>
    %144 = arith.mulf %143, %135 : vector<2x4x64xf32>
    %145 = vector.extract_strided_slice %20 {offsets = [0, 10, 0, 0], sizes = [2, 1, 4, 64], strides = [1, 1, 1, 1]} : vector<2x16x4x64xf32> to vector<2x1x4x64xf32>
    %146 = vector.shape_cast %145 : vector<2x1x4x64xf32> to vector<2x4x64xf32>
    %147 = arith.addf %144, %146 : vector<2x4x64xf32>
    %148 = vector.extract_strided_slice %6 {offsets = [0, 10, 0], sizes = [2, 1, 4], strides = [1, 1, 1]} : vector<2x16x4xf32> to vector<2x1x4xf32>
    %149 = vector.shape_cast %148 : vector<2x1x4xf32> to vector<2x4xf32>
    %150 = vector.shape_cast %149 : vector<2x4xf32> to vector<2x4x1xf32>
    %151 = vector.broadcast %150 : vector<2x4x1xf32> to vector<2x4x64xf32>
    %152 = arith.mulf %147, %151 : vector<2x4x64xf32>
    %cst_28 = arith.constant dense<0.000000e+00> : vector<2x64xf32>
    %153 = vector.multi_reduction <add>, %152, %cst_28 [1] : vector<2x4x64xf32> to vector<2x64xf32>
    %154 = vector.extract_strided_slice %14 {offsets = [0, 11, 0, 0], sizes = [2, 1, 4, 64], strides = [1, 1, 1, 1]} : vector<2x16x4x64xf32> to vector<2x1x4x64xf32>
    %155 = vector.shape_cast %154 : vector<2x1x4x64xf32> to vector<2x4x64xf32>
    %156 = arith.mulf %155, %147 : vector<2x4x64xf32>
    %157 = vector.extract_strided_slice %20 {offsets = [0, 11, 0, 0], sizes = [2, 1, 4, 64], strides = [1, 1, 1, 1]} : vector<2x16x4x64xf32> to vector<2x1x4x64xf32>
    %158 = vector.shape_cast %157 : vector<2x1x4x64xf32> to vector<2x4x64xf32>
    %159 = arith.addf %156, %158 : vector<2x4x64xf32>
    %160 = vector.extract_strided_slice %6 {offsets = [0, 11, 0], sizes = [2, 1, 4], strides = [1, 1, 1]} : vector<2x16x4xf32> to vector<2x1x4xf32>
    %161 = vector.shape_cast %160 : vector<2x1x4xf32> to vector<2x4xf32>
    %162 = vector.shape_cast %161 : vector<2x4xf32> to vector<2x4x1xf32>
    %163 = vector.broadcast %162 : vector<2x4x1xf32> to vector<2x4x64xf32>
    %164 = arith.mulf %159, %163 : vector<2x4x64xf32>
    %cst_29 = arith.constant dense<0.000000e+00> : vector<2x64xf32>
    %165 = vector.multi_reduction <add>, %164, %cst_29 [1] : vector<2x4x64xf32> to vector<2x64xf32>
    %166 = vector.extract_strided_slice %14 {offsets = [0, 12, 0, 0], sizes = [2, 1, 4, 64], strides = [1, 1, 1, 1]} : vector<2x16x4x64xf32> to vector<2x1x4x64xf32>
    %167 = vector.shape_cast %166 : vector<2x1x4x64xf32> to vector<2x4x64xf32>
    %168 = arith.mulf %167, %159 : vector<2x4x64xf32>
    %169 = vector.extract_strided_slice %20 {offsets = [0, 12, 0, 0], sizes = [2, 1, 4, 64], strides = [1, 1, 1, 1]} : vector<2x16x4x64xf32> to vector<2x1x4x64xf32>
    %170 = vector.shape_cast %169 : vector<2x1x4x64xf32> to vector<2x4x64xf32>
    %171 = arith.addf %168, %170 : vector<2x4x64xf32>
    %172 = vector.extract_strided_slice %6 {offsets = [0, 12, 0], sizes = [2, 1, 4], strides = [1, 1, 1]} : vector<2x16x4xf32> to vector<2x1x4xf32>
    %173 = vector.shape_cast %172 : vector<2x1x4xf32> to vector<2x4xf32>
    %174 = vector.shape_cast %173 : vector<2x4xf32> to vector<2x4x1xf32>
    %175 = vector.broadcast %174 : vector<2x4x1xf32> to vector<2x4x64xf32>
    %176 = arith.mulf %171, %175 : vector<2x4x64xf32>
    %cst_30 = arith.constant dense<0.000000e+00> : vector<2x64xf32>
    %177 = vector.multi_reduction <add>, %176, %cst_30 [1] : vector<2x4x64xf32> to vector<2x64xf32>
    %178 = vector.extract_strided_slice %14 {offsets = [0, 13, 0, 0], sizes = [2, 1, 4, 64], strides = [1, 1, 1, 1]} : vector<2x16x4x64xf32> to vector<2x1x4x64xf32>
    %179 = vector.shape_cast %178 : vector<2x1x4x64xf32> to vector<2x4x64xf32>
    %180 = arith.mulf %179, %171 : vector<2x4x64xf32>
    %181 = vector.extract_strided_slice %20 {offsets = [0, 13, 0, 0], sizes = [2, 1, 4, 64], strides = [1, 1, 1, 1]} : vector<2x16x4x64xf32> to vector<2x1x4x64xf32>
    %182 = vector.shape_cast %181 : vector<2x1x4x64xf32> to vector<2x4x64xf32>
    %183 = arith.addf %180, %182 : vector<2x4x64xf32>
    %184 = vector.extract_strided_slice %6 {offsets = [0, 13, 0], sizes = [2, 1, 4], strides = [1, 1, 1]} : vector<2x16x4xf32> to vector<2x1x4xf32>
    %185 = vector.shape_cast %184 : vector<2x1x4xf32> to vector<2x4xf32>
    %186 = vector.shape_cast %185 : vector<2x4xf32> to vector<2x4x1xf32>
    %187 = vector.broadcast %186 : vector<2x4x1xf32> to vector<2x4x64xf32>
    %188 = arith.mulf %183, %187 : vector<2x4x64xf32>
    %cst_31 = arith.constant dense<0.000000e+00> : vector<2x64xf32>
    %189 = vector.multi_reduction <add>, %188, %cst_31 [1] : vector<2x4x64xf32> to vector<2x64xf32>
    %190 = vector.extract_strided_slice %14 {offsets = [0, 14, 0, 0], sizes = [2, 1, 4, 64], strides = [1, 1, 1, 1]} : vector<2x16x4x64xf32> to vector<2x1x4x64xf32>
    %191 = vector.shape_cast %190 : vector<2x1x4x64xf32> to vector<2x4x64xf32>
    %192 = arith.mulf %191, %183 : vector<2x4x64xf32>
    %193 = vector.extract_strided_slice %20 {offsets = [0, 14, 0, 0], sizes = [2, 1, 4, 64], strides = [1, 1, 1, 1]} : vector<2x16x4x64xf32> to vector<2x1x4x64xf32>
    %194 = vector.shape_cast %193 : vector<2x1x4x64xf32> to vector<2x4x64xf32>
    %195 = arith.addf %192, %194 : vector<2x4x64xf32>
    %196 = vector.extract_strided_slice %6 {offsets = [0, 14, 0], sizes = [2, 1, 4], strides = [1, 1, 1]} : vector<2x16x4xf32> to vector<2x1x4xf32>
    %197 = vector.shape_cast %196 : vector<2x1x4xf32> to vector<2x4xf32>
    %198 = vector.shape_cast %197 : vector<2x4xf32> to vector<2x4x1xf32>
    %199 = vector.broadcast %198 : vector<2x4x1xf32> to vector<2x4x64xf32>
    %200 = arith.mulf %195, %199 : vector<2x4x64xf32>
    %cst_32 = arith.constant dense<0.000000e+00> : vector<2x64xf32>
    %201 = vector.multi_reduction <add>, %200, %cst_32 [1] : vector<2x4x64xf32> to vector<2x64xf32>
    %202 = vector.extract_strided_slice %14 {offsets = [0, 15, 0, 0], sizes = [2, 1, 4, 64], strides = [1, 1, 1, 1]} : vector<2x16x4x64xf32> to vector<2x1x4x64xf32>
    %203 = vector.shape_cast %202 : vector<2x1x4x64xf32> to vector<2x4x64xf32>
    %204 = arith.mulf %203, %195 : vector<2x4x64xf32>
    %205 = vector.extract_strided_slice %20 {offsets = [0, 15, 0, 0], sizes = [2, 1, 4, 64], strides = [1, 1, 1, 1]} : vector<2x16x4x64xf32> to vector<2x1x4x64xf32>
    %206 = vector.shape_cast %205 : vector<2x1x4x64xf32> to vector<2x4x64xf32>
    %207 = arith.addf %204, %206 : vector<2x4x64xf32>
    %208 = vector.extract_strided_slice %6 {offsets = [0, 15, 0], sizes = [2, 1, 4], strides = [1, 1, 1]} : vector<2x16x4xf32> to vector<2x1x4xf32>
    %209 = vector.shape_cast %208 : vector<2x1x4xf32> to vector<2x4xf32>
    %210 = vector.shape_cast %209 : vector<2x4xf32> to vector<2x4x1xf32>
    %211 = vector.broadcast %210 : vector<2x4x1xf32> to vector<2x4x64xf32>
    %212 = arith.mulf %207, %211 : vector<2x4x64xf32>
    %cst_33 = arith.constant dense<0.000000e+00> : vector<2x64xf32>
    %213 = vector.multi_reduction <add>, %212, %cst_33 [1] : vector<2x4x64xf32> to vector<2x64xf32>
    %c0_34 = arith.constant 0 : index
    %c0_35 = arith.constant 0 : index
    %c0_36 = arith.constant 0 : index
    %214 = vector.load %arg9[%c0_34, %c0_35, %c0_36] : memref<2x4x64xf32, #tpu.memory_space<vmem>>, vector<2x4x64xf32>
    tpu.vector_store %arg9[%c0_34, %c0_35, %c0_36], %207 {strides = array<i32>} : memref<2x4x64xf32, #tpu.memory_space<vmem>>, vector<2x4x64xf32>,
    %215 = vector.shape_cast %33 : vector<2x64xf32> to vector<2x1x64xf32>
    %216 = vector.shape_cast %45 : vector<2x64xf32> to vector<2x1x64xf32>
    %217 = vector.shape_cast %57 : vector<2x64xf32> to vector<2x1x64xf32>
    %218 = vector.shape_cast %69 : vector<2x64xf32> to vector<2x1x64xf32>
    %219 = vector.shape_cast %81 : vector<2x64xf32> to vector<2x1x64xf32>
    %220 = vector.shape_cast %93 : vector<2x64xf32> to vector<2x1x64xf32>
    %221 = vector.shape_cast %105 : vector<2x64xf32> to vector<2x1x64xf32>
    %222 = vector.shape_cast %117 : vector<2x64xf32> to vector<2x1x64xf32>
    %223 = vector.shape_cast %129 : vector<2x64xf32> to vector<2x1x64xf32>
    %224 = vector.shape_cast %141 : vector<2x64xf32> to vector<2x1x64xf32>
    %225 = vector.shape_cast %153 : vector<2x64xf32> to vector<2x1x64xf32>
    %226 = vector.shape_cast %165 : vector<2x64xf32> to vector<2x1x64xf32>
    %227 = vector.shape_cast %177 : vector<2x64xf32> to vector<2x1x64xf32>
    %228 = vector.shape_cast %189 : vector<2x64xf32> to vector<2x1x64xf32>
    %229 = vector.shape_cast %201 : vector<2x64xf32> to vector<2x1x64xf32>
    %230 = vector.shape_cast %213 : vector<2x64xf32> to vector<2x1x64xf32>
    %231 = tpu.concatenate %215, %216, %217, %218, %219, %220, %221, %222, %223, %224, %225, %226, %227, %228, %229, %230 in 1 : vector<2x1x64xf32>, vector<2x1x64xf32>, vector<2x1x64xf32>, vector<2x1x64xf32>, vector<2x1x64xf32>, vector<2x1x64xf32>, vector<2x1x64xf32>, vector<2x1x64xf32>, vector<2x1x64xf32>, vector<2x1x64xf32>, vector<2x1x64xf32>, vector<2x1x64xf32>, vector<2x1x64xf32>, vector<2x1x64xf32>, vector<2x1x64xf32>, vector<2x1x64xf32> -> vector<2x16x64xf32>
    %232 = vector.shape_cast %8 : vector<1x64xf32> to vector<1x1x64xf32>
    %233 = vector.broadcast %232 : vector<1x1x64xf32> to vector<2x16x64xf32>
    %234 = arith.mulf %4, %233 : vector<2x16x64xf32>
    %235 = arith.addf %231, %234 : vector<2x16x64xf32>
    %c0_37 = arith.constant 0 : index
    %c0_38 = arith.constant 0 : index
    %c0_39 = arith.constant 0 : index
    %236 = vector.load %arg8[%c0_37, %c0_38, %c0_39] : memref<2x16x64xf32, #tpu.memory_space<vmem>>, vector<2x16x64xf32>
    tpu.vector_store %arg8[%c0_37, %c0_38, %c0_39], %235 {strides = array<i32>} : memref<2x16x64xf32, #tpu.memory_space<vmem>>, vector<2x16x64xf32>,
    return
  }
  func.func @transform_0(%arg0: i32, %arg1: i32) -> (i32, i32, i32) {
    %c0_i32 = arith.constant 0 : i32
    %c0_i32_0 = arith.constant 0 : i32
    return %c0_i32, %arg1, %arg0 : i32, i32, i32
  }
  func.func @transform_1(%arg0: i32, %arg1: i32) -> (i32, i32, i32) {
    %c0_i32 = arith.constant 0 : i32
    %c0_i32_0 = arith.constant 0 : i32
    return %c0_i32, %arg1, %arg0 : i32, i32, i32
  }
  func.func @transform_2(%arg0: i32, %arg1: i32) -> (i32, i32, i32) {
    %c0_i32 = arith.constant 0 : i32
    %c0_i32_0 = arith.constant 0 : i32
    %c0_i32_1 = arith.constant 0 : i32
    return %c0_i32, %arg1, %c0_i32_0 : i32, i32, i32
  }
  func.func @transform_3(%arg0: i32, %arg1: i32) -> (i32, i32, i32) {
    %c0_i32 = arith.constant 0 : i32
    %c0_i32_0 = arith.constant 0 : i32
    %c0_i32_1 = arith.constant 0 : i32
    return %c0_i32, %arg1, %c0_i32_0 : i32, i32, i32
  }
  func.func @transform_4(%arg0: i32, %arg1: i32) -> (i32, i32) {
    %c0_i32 = arith.constant 0 : i32
    %c0_i32_0 = arith.constant 0 : i32
    return %c0_i32, %arg0 : i32, i32
  }
  func.func @transform_5(%arg0: i32, %arg1: i32) -> (i32, i32) {
    %c0_i32 = arith.constant 0 : i32
    %c0_i32_0 = arith.constant 0 : i32
    return %c0_i32, %arg0 : i32, i32
  }
  func.func @transform_6(%arg0: i32, %arg1: i32) -> (i32, i32, i32) {
    %c0_i32 = arith.constant 0 : i32
    %c0_i32_0 = arith.constant 0 : i32
    return %c0_i32, %arg1, %arg0 : i32, i32, i32
  }
}

</mosaic_0001>

<bundles_post_ra>
// kernel: _lambda_.2
= control target key start
LH: loop header
LB: loop body
LE: loop exit
PB: predicated region body
PF: predicated region fallthrough
CT: control target
= control target key end

     0   :  { %v56_v0 = vlaneseq  ;;  %vm27_vm0 = vcmask 519168   ;;  %v1805_v1 = vmov 0.0   ;;  %v1806_v49 = vmov 1966171168   ;;  %s2796_s2 = inlined_call_operand.vmem [shape: f32[2,16,4], index: 2, kind: input, shape index: {}]   ;;  %s2797_s3 = inlined_call_operand.vmem [shape: f32[2,16,4], index: 3, kind: input, shape index: {}]   ;;  %s2798_s0 = inlined_call_operand.vmem [shape: f32[2,16,64], index: 0, kind: input, shape index: {}]   ;;  %s2799_s1 = inlined_call_operand.vmem [shape: f32[2,16,64], index: 1, kind: input, shape index: {}]   ;;  %s2800_s4 = inlined_call_operand.vmem [shape: f32[4,64], index: 4, kind: input, shape index: {}]   ;;  %s2801_s5 = inlined_call_operand.vmem [shape: f32[1,64], index: 5, kind: input, shape index: {}]   ;;  %s2802_s6 = inlined_call_operand.vmem [shape: f32[2,16,64], index: 6, kind: output, shape index: {}]  }
   0x1   :  { %28 = vst.msk [vmem:[#allocation2] sm:$0xf] %vm27_vm0, %v1805_v1  ;;  %29 = vst.msk [vmem:[#allocation2 + $0x4] sm:$0xf] %vm27_vm0, %v1805_v1  ;;  %v38_v3 = vld [vmem:[%s2796_s2] sm:$0xff]  ;;  %v40_v6 = vld [vmem:[%s2796_s2 + $0x10] sm:$0xff]  ;;  %v54_v50 = vunpack.c.l.s4 %v1806_v49 }
   0x2   :  { %v1844_v2 = vshrl.u32 %v56_v0, 7  ;;  %v1895_v29 = vld [vmem:[%s2796_s2 + $0x18] sm:$0xff]  ;;  %v1900_v30 = vld [vmem:[%s2796_s2 + $0x8] sm:$0xff]  ;;  %v1933_v45 = vld [vmem:[%s2797_s3 + $0x10] sm:$0xff]  ;;  %vm1673_vm1 = vcmask 1040384   ;;  %vm1676_vm2 = vcmask 1041408  }
   0x3   :  { %v1938_v46 = vld [vmem:[%s2797_s3] sm:$0xff]  ;;  %v1951_v53 = vld [vmem:[%s2797_s3 + $0x18] sm:$0xff]  ;;  %v1956_v54 = vld [vmem:[%s2797_s3 + $0x8] sm:$0xff]  ;;  %v55_v55 = vunpack.c.0.s8 %v54_v50  ;;  %vm1679_vm3 = vcmask 1042432   ;;  %vm1682_vm4 = vcmask 1043456   ;;  %vm1685_vm5 = vcmask 1044480  }
   0x4   :  { %v1850_v4 = vsub.s32 0, %v1844_v2  ;;  %v1853_v5 = vsub.s32 1, %v1844_v2  ;;  %v1863_v11 = vsub.s32 2, %v1844_v2  ;;  %v1868_v14 = vsub.s32 3, %v1844_v2  ;;  %v1968_v59 = vld [vmem:[%s2798_s0] sm:$0xff]  ;;  %v1977_v62 = vld [vmem:[%s2798_s0 + $0x10] sm:$0xff] }
   0x5   :  { %v1873_v17 = vsub.s32 4, %v1844_v2  ;;  %v1878_v20 = vsub.s32 5, %v1844_v2  ;;  %v1883_v23 = vsub.s32 6, %v1844_v2  ;;  %v1888_v26 = vsub.s32 7, %v1844_v2  ;;  %v34_v63 = vld [vmem:[%s2799_s1] sm:$0xff] }
   0x6   :  { %v718_v7 = vrot.slane %v38_v3, %v1853_v5  ;;  %v711_v8 = vrot.slane %v38_v3, %v1850_v4  ;;  %v830_v9 = vrot.slane %v40_v6, %v1853_v5  ;;  %v823_v10 = vrot.slane %v40_v6, %v1850_v4 }
   0x7   :  { %v837_v12 = vrot.slane %v40_v6, %v1863_v11  ;;  %v725_v13 = vrot.slane %v38_v3, %v1863_v11  ;;  %v844_v15 = vrot.slane %v40_v6, %v1868_v14  ;;  %v732_v16 = vrot.slane %v38_v3, %v1868_v14 }
   0x8   :  { %720 = vbcast.lane.b32.xlu1 %v718_v7, 256  ;;  %713 = vbcast.lane.b32.xlu0 %v711_v8, 256  ;;  %v851_v18 = vrot.slane %v40_v6, %v1873_v17  ;;  %v739_v19 = vrot.slane %v38_v3, %v1873_v17  ;;  %v858_v21 = vrot.slane %v40_v6, %v1878_v20  ;;  %vm1688_vm6 = vcmask 1045504  }
   0x9   :  { %v746_v22 = vrot.slane %v38_v3, %v1878_v20  ;;  %v865_v24 = vrot.slane %v40_v6, %v1883_v23  ;;  %v753_v25 = vrot.slane %v38_v3, %v1883_v23  ;;  %v872_v27 = vrot.slane %v40_v6, %v1888_v26 }
   0xa   :  { %v760_v28 = vrot.slane %v38_v3, %v1888_v26  ;;  %v879_v31 = vrot.slane %v1895_v29, %v1850_v4  ;;  %v767_v32 = vrot.slane %v1900_v30, %v1850_v4  ;;  %v886_v33 = vrot.slane %v1895_v29, %v1853_v5 }
   0xb   :  { %v774_v34 = vrot.slane %v1900_v30, %v1853_v5  ;;  %v893_v35 = vrot.slane %v1895_v29, %v1863_v11  ;;  %v781_v36 = vrot.slane %v1900_v30, %v1863_v11  ;;  %v900_v37 = vrot.slane %v1895_v29, %v1868_v14 }
   0xc   :  { %832 = vbcast.lane.b32.xlu1 %v830_v9, 256  ;;  %825 = vbcast.lane.b32.xlu0 %v823_v10, 256  ;;  %v788_v38 = vrot.slane %v1900_v30, %v1868_v14  ;;  %v907_v39 = vrot.slane %v1895_v29, %v1873_v17  ;;  %v795_v40 = vrot.slane %v1900_v30, %v1873_v17  ;;  %vm1691_vm7 = vcmask 1046528  }
   0xd   :  { %v914_v41 = vrot.slane %v1895_v29, %v1878_v20  ;;  %v802_v42 = vrot.slane %v1900_v30, %v1878_v20  ;;  %v921_v43 = vrot.slane %v1895_v29, %v1883_v23  ;;  %v809_v44 = vrot.slane %v1900_v30, %v1883_v23 }
   0xe   :  { %v1140_v47 = vrot.slane %v1933_v45, %v1850_v4  ;;  %v1133_v48 = vrot.slane %v1938_v46, %v1850_v4  ;;  %v1175_v51 = vrot.slane %v1933_v45, %v1853_v5  ;;  %v1168_v52 = vrot.slane %v1938_v46, %v1853_v5 }
   0xf   :  { %v1413_v56 = vrot.slane %v1951_v53, %v1850_v4  ;;  %v1406_v57 = vrot.slane %v1956_v54, %v1850_v4  ;;  %v1963_v58 = vsub.s32 %v55_v55, %v1844_v2  ;;  %v1447_v60 = vrot.slane %v1951_v53, %v1853_v5  ;;  %v36_v2 = vld [vmem:[%s2799_s1 + $0x10] sm:$0xff] }
  0x10   :  { %839 = vbcast.lane.b32.xlu1 %v837_v12, 256  ;;  %727 = vbcast.lane.b32.xlu0 %v725_v13, 256  ;;  %v1440_v61 = vrot.slane %v1956_v54, %v1853_v5  ;;  %v1209_v1 = vrot.slane %v1933_v45, %v1863_v11  ;;  %v1202_v5 = vrot.slane %v1938_v46, %v1863_v11  ;;  %vm1722_vm8 = vcmask 523264  }
  0x11   :  { %v59_v0 = vrot.slane %v1968_v59, %v1963_v58  ;;  %v157_v3 = vrot.slane %v1977_v62, %v1963_v58  ;;  %v1994_v6 = vmul.f32 %v34_v63, %v1968_v59  ;;  %v2000_v9 = vmul.f32 %v36_v2, %v1977_v62 }
  0x12   :  { %v1481_v10 = vrot.slane %v1951_v53, %v1863_v11  ;;  %v1474_v12 = vrot.slane %v1956_v54, %v1863_v11  ;;  %v1243_v11 = vrot.slane %v1933_v45, %v1868_v14  ;;  %v1617_v55 = vrot.slane %v1951_v53, %v1883_v23 }
  0x13   :  { %v67_v7 = vcombine.high %v59_v0, %v59_v0  ;;  %v1997_v8 = vrot.slane %v59_v0, %v1963_v58  ;;  %v165_v13 = vcombine.high %v157_v3, %v157_v3  ;;  %v52_v2 = vcombine.high %v1968_v59, %v1968_v59 }
  0x14   :  { %846 = vbcast.lane.b32.xlu1 %v844_v15, 256  ;;  %734 = vbcast.lane.b32.xlu0 %v732_v16, 256  ;;  %v173_v15 = vrot.slane %v157_v3, %v1963_v58  ;;  %v928_v16 = vrot.slane %v1895_v29, %v1888_v26  ;;  %v617_v29 = vrot.slane %v2000_v9, %v1963_v58 }
  0x16   :  { %v195_v50 = vcombine.high %v173_v15, %v173_v15 }
  0x18   :  { %853 = vbcast.lane.b32.xlu1 %v851_v18, 256  ;;  %741 = vbcast.lane.b32.xlu0 %v739_v19, 256  ;;  %v519_v18 = vrot.slane %v1994_v6, %v1963_v58  ;;  %v2012_v19 = vrot.slane %v67_v7, %v1963_v58 }
  0x1c   :  { %860 = vbcast.lane.b32.xlu1 %v858_v21, 256  ;;  %748 = vbcast.lane.b32.xlu0 %v746_v22, 256  ;;  %v816_v21 = vrot.slane %v1900_v30, %v1888_v26  ;;  %v1236_v22 = vrot.slane %v1938_v46, %v1868_v14  ;;  %v1270_v30 = vrot.slane %v1938_v46, %v1873_v17 }
  0x20   :  { %867 = vbcast.lane.b32.xlu1 %v865_v24, 256  ;;  %755 = vbcast.lane.b32.xlu0 %v753_v25, 256  ;;  %v1515_v24 = vrot.slane %v1951_v53, %v1868_v14  ;;  %v1508_v25 = vrot.slane %v1956_v54, %v1868_v14  ;;  %v187_v14 = vrot.slane %v165_v13, %v1963_v58 }
  0x22   :  { %v197_v13 = vcombine.high %v187_v14, %v187_v14 }
  0x24   :  { %874 = vbcast.lane.b32.xlu1 %v872_v27, 256  ;;  %762 = vbcast.lane.b32.xlu0 %v760_v28, 256  ;;  %v1277_v27 = vrot.slane %v1933_v45, %v1873_v17  ;;  %v251_v28 = vrot.slane %v1997_v8, %v1850_v4 }
  0x28   :  { %881 = vbcast.lane.b32.xlu1 %v879_v31, 256  ;;  %769 = vbcast.lane.b32.xlu0 %v767_v32, 256  ;;  %v1549_v31 = vrot.slane %v1951_v53, %v1873_v17  ;;  %v2037_v32 = vld [vmem:[%s2800_s4] sm:$0xf] }
  0x2c   :  { %888 = vbcast.lane.b32.xlu1 %v886_v33, 256  ;;  %776 = vbcast.lane.b32.xlu0 %v774_v34, 256  ;;  %v315_v33 = vrot.slane %v173_v15, %v1850_v4  ;;  %v1542_v34 = vrot.slane %v1956_v54, %v1873_v17 }
  0x2e   :  { %v424_v49 = vmul.f32 %v315_v33, %v2037_v32  ;;  %v327_v33 = vrot.slane %v197_v13, %v1850_v4 }
  0x30   :  { %895 = vbcast.lane.b32.xlu1 %v893_v35, 256  ;;  %783 = vbcast.lane.b32.xlu0 %v781_v36, 256  ;;  %v527_v35 = vcombine.high %v519_v18, %v519_v18  ;;  %v255_v36 = vrot.slane %v2012_v19, %v1850_v4  ;;  %v472_v7 = vmul.f32 1.442695, %v424_v49 }
  0x34   :  { %902 = vbcast.lane.b32.xlu1 %v900_v37, 256  ;;  %790 = vbcast.lane.b32.xlu0 %v788_v38, 256  ;;  %v1311_v37 = vrot.slane %v1933_v45, %v1878_v20  ;;  %v1304_v38 = vrot.slane %v1938_v46, %v1878_v20 }
  0x38   :  { %909 = vbcast.lane.b32.xlu1 %v907_v39, 256  ;;  %797 = vbcast.lane.b32.xlu0 %v795_v40, 256  ;;  %v1583_v39 = vrot.slane %v1951_v53, %v1878_v20  ;;  %v1576_v40 = vrot.slane %v1956_v54, %v1878_v20 }
  0x3c   :  { %916 = vbcast.lane.b32.xlu1 %v914_v41, 256  ;;  %804 = vbcast.lane.b32.xlu0 %v802_v42, 256  ;;  %v1345_v41 = vrot.slane %v1933_v45, %v1883_v23  ;;  %v1338_v42 = vrot.slane %v1938_v46, %v1883_v23 }
  0x40   :  { %923 = vbcast.lane.b32.xlu1 %v921_v43, 256  ;;  %811 = vbcast.lane.b32.xlu0 %v809_v44, 256  ;;  %v408_v43 = vmul.f32 %v251_v28, %v2037_v32  ;;  %v625_v44 = vcombine.high %v617_v29, %v617_v29 }
  0x42   :  { %v440_v63 = vmul.f32 1.442695, %v408_v43  ;;  %v2079_v0 = vrot.slane %v625_v44, %v1963_v58 }
  0x44   :  { %1142 = vbcast.lane.b32.xlu1 %v1140_v47, 256  ;;  %1135 = vbcast.lane.b32.xlu0 %v1133_v48, 256  ;;  %v2059_v47 = vrot.slane %v519_v18, %v1963_v58  ;;  %v319_v48 = vrot.slane %v187_v14, %v1850_v4  ;;  %1737 = vpow2.f32 %v440_v63  ;;  %v1644_v63 = vrot.slane %v1956_v54, %v1888_v26 }
  0x45   :  { %1739 = vpow2.f32 %v472_v7 }
  0x46   :  { %v935_v3 = vrot.slane %v2059_v47, %v1850_v4  ;;  %v557_v15 = vcombine.high %v2059_v47, %v2059_v47 }
  0x48   :  { %1177 = vbcast.lane.b32.xlu1 %v1175_v51, 256  ;;  %1170 = vbcast.lane.b32.xlu0 %v1168_v52, 256  ;;  %v2064_v51 = vrot.slane %v527_v35, %v1963_v58  ;;  %v409_v52 = vmul.f32 %v255_v36, %v2037_v32  ;;  %v2112_v36 = vrot.slane %v557_v15, %v1850_v4 }
  0x4c   :  { %1415 = vbcast.lane.b32.xlu1 %v1413_v56, 256  ;;  %1408 = vbcast.lane.b32.xlu0 %v1406_v57, 256  ;;  %v1610_v56 = vrot.slane %v1956_v54, %v1883_v23  ;;  %v2072_v57 = vrot.slane %v617_v29, %v1963_v58  ;;  %v1372_v29 = vrot.slane %v1938_v46, %v1888_v26 }
  0x4e   :  { %v999_v59 = vrot.slane %v2072_v57, %v1850_v4 }
  0x50   :  { %1449 = vbcast.lane.b32.xlu1 %v1447_v60, 256  ;;  %1442 = vbcast.lane.b32.xlu0 %v1440_v61, 256  ;;  %v1379_v60 = vrot.slane %v1933_v45, %v1888_v26  ;;  %v150_v61 = vcombine.high %v1977_v62, %v1977_v62  ;;  %v939_v62 = vrot.slane %v2064_v51, %v1850_v4 }
  0x52   :  { %v164_v18 = vrot.slane %v150_v61, %v1963_v58  ;;  %v1651_v61 = vrot.slane %v1951_v53, %v1888_v26 }
  0x54   :  { %1211 = vbcast.lane.b32.xlu1 %v1209_v1, 256  ;;  %1204 = vbcast.lane.b32.xlu0 %v1202_v5, 256  ;;  %v97_v1 = vcombine.high %v1997_v8, %v1997_v8  ;;  %v425_v5 = vmul.f32 %v319_v48, %v2037_v32  ;;  %v655_v8 = vcombine.high %v2072_v57, %v2072_v57 }
  0x55   :  { %v166_v35 = vcombine.high %v164_v18, %v164_v18  ;;  %v180_v44 = vrot.slane %v164_v18, %v1963_v58  ;;  %v610_v48 = vcombine.high %v2000_v9, %v2000_v9  ;;  %v427_v9 = vmul.f32 %v327_v33, %v2037_v32 }
  0x56   :  { %v474_v28 = vmul.f32 1.442695, %v425_v5 }
  0x57   :  { %v194_v5 = vrot.slane %v166_v35, %v1963_v58 }
  0x58   :  { %1483 = vbcast.lane.b32.xlu1 %v1481_v10, 256  ;;  %1476 = vbcast.lane.b32.xlu0 %v1474_v12, 256  ;;  %v323_v10 = vrot.slane %v195_v50, %v1850_v4  ;;  %v442_v12 = vmul.f32 1.442695, %v409_v52 }
  0x59   :  { %v335_v33 = vrot.slane %v194_v5, %v1850_v4  ;;  %v198_v35 = vcombine.high %v194_v5, %v194_v5 }
  0x5a   :  { %v426_v14 = vmul.f32 %v323_v10, %v2037_v32  ;;  %1741 = vpow2.f32 %v442_v12  ;;  %v624_v10 = vrot.slane %v610_v48, %v1963_v58  ;;  %v196_v12 = vcombine.high %v180_v44, %v180_v44 }
  0x5b   :  { %1743 = vpow2.f32 %v474_v28  ;;  %v478_v28 = vmul.f32 1.442695, %v427_v9 }
  0x5c   :  { %930 = vbcast.lane.b32.xlu1 %v928_v16, 256  ;;  %818 = vbcast.lane.b32.xlu0 %v816_v21, 256  ;;  %v99_v16 = vcombine.high %v2012_v19, %v2012_v19  ;;  %v1003_v21 = vrot.slane %v2079_v0, %v1850_v4  ;;  %v2108_v19 = vrot.slane %v655_v8, %v1850_v4  ;;  %v476_v52 = vmul.f32 1.442695, %v426_v14 }
  0x5d   :  { %v2164_v17 = vrot.slane %v624_v10, %v1963_v58 }
  0x5e   :  { %v263_v43 = vrot.slane %v99_v16, %v1850_v4  ;;  %1745 = vpow2.f32 %v476_v52  ;;  %v626_v16 = vcombine.high %v624_v10, %v624_v10 }
  0x60   :  { %1245 = vbcast.lane.b32.xlu1 %v1243_v11, 256  ;;  %1238 = vbcast.lane.b32.xlu0 %v1236_v22, 256  ;;  %v259_v11 = vrot.slane %v97_v1, %v1850_v4  ;;  %v66_v22 = vrot.slane %v52_v2, %v1963_v58  ;;  %v512_v1 = vcombine.high %v1994_v6, %v1994_v6 }
  0x61   :  { %v559_v2 = vcombine.high %v2064_v51, %v2064_v51  ;;  %v411_v7 = vmul.f32 %v263_v43, %v2037_v32  ;;  %v331_v6 = vrot.slane %v180_v44, %v1850_v4  ;;  %v1125_v44 = vld [vmem:[#allocation2 + $0x4] sm:$0xf]  ;;  %v2175_v9 = vrot.slane %v626_v16, %v1963_v58 }
  0x62   :  { %v82_v49 = vrot.slane %v66_v22, %v1963_v58  ;;  %v68_v50 = vcombine.high %v66_v22, %v66_v22  ;;  %v526_v15 = vrot.slane %v512_v1, %v1963_v58  ;;  %v1124_v22 = vld [vmem:[#allocation2] sm:$0xf]  ;;  %v656_v16 = vcombine.high %v2164_v17, %v2164_v17 }
  0x63   :  { %v2156_v14 = vrot.slane %v559_v2, %v1850_v4  ;;  %v446_v48 = vmul.f32 1.442695, %v411_v7  ;;  %v429_v7 = vmul.f32 %v335_v33, %v2037_v32  ;;  %v37_v33 = vld [vmem:[%s2799_s1 + $0x18] sm:$0xff]  ;;  %v658_v20 = vcombine.high %v2175_v9, %v2175_v9 }
  0x64   :  { %1517 = vbcast.lane.b32.xlu1 %v1515_v24, 256  ;;  %1510 = vbcast.lane.b32.xlu0 %v1508_v25, 256  ;;  %v410_v24 = vmul.f32 %v259_v11, %v2037_v32  ;;  %v657_v25 = vcombine.high %v2079_v0, %v2079_v0  ;;  %v2146_v13 = vrot.slane %v68_v50, %v1963_v58  ;;  %v1738_v11 = vpop.eup %1737 }
  0x65   :  { %v98_v18 = vcombine.high %v82_v49, %v82_v49  ;;  %v1740_v43 = vpop.eup %1739  ;;  %v2169_v52 = vmul.f32 %v1738_v11, %v1124_v22  ;;  %v2172_v1 = vrot.slane %v526_v15, %v1963_v58 }
  0x66   :  { %v2142_v8 = vrot.slane %v657_v25, %v1850_v4  ;;  %v528_v25 = vcombine.high %v526_v15, %v526_v15  ;;  %v271_v50 = vrot.slane %v2146_v13, %v1850_v4  ;;  %v2184_v5 = vmul.f32 %v1740_v43, %v1125_v44 }
  0x67   :  { %v275_v2 = vrot.slane %v98_v18, %v1850_v4  ;;  %v33_v18 = vld [vmem:[%s2798_s0 + $0x18] sm:$0xff]  ;;  %v951_v11 = vrot.slane %v2172_v1, %v1850_v4  ;;  %v482_v43 = vmul.f32 1.442695, %v429_v7  ;;  %v558_v44 = vcombine.high %v2172_v1, %v2172_v1 }
  0x68   :  { %1279 = vbcast.lane.b32.xlu1 %v1277_v27, 256  ;;  %1272 = vbcast.lane.b32.xlu0 %v1270_v30, 256  ;;  %v444_v27 = vmul.f32 1.442695, %v410_v24  ;;  %v267_v30 = vrot.slane %v82_v49, %v1850_v4  ;;  %v428_v24 = vmul.f32 %v331_v6, %v2037_v32  ;;  %v2161_v49 = vpop.eup %1741  ;;  %v343_v6 = vrot.slane %v198_v35, %v1850_v4 }
  0x69   :  { %v413_v15 = vmul.f32 %v271_v50, %v2037_v32  ;;  %v199_v35 = vcombine.high %v33_v18, %v33_v18  ;;  %v2230_v50 = vmul.f32 %v37_v33, %v33_v18  ;;  %v206_v7 = vrot.slane %v33_v18, %v1963_v58 }
  0x6a   :  { %1747 = vpow2.f32 %v444_v27  ;;  %v480_v10 = vmul.f32 1.442695, %v428_v24  ;;  %v100_v24 = vcombine.high %v2146_v13, %v2146_v13  ;;  %v2252_v18 = vrot.slane %v658_v20, %v1850_v4 }
  0x6b   :  { %1749 = vpow2.f32 %v478_v28  ;;  %v414_v28 = vmul.f32 %v275_v2, %v2037_v32 }
  0x6c   :  { %1551 = vbcast.lane.b32.xlu1 %v1549_v31, 256  ;;  %1544 = vbcast.lane.b32.xlu0 %v1542_v34, 256  ;;  %v339_v31 = vrot.slane %v196_v12, %v1850_v4  ;;  %v412_v34 = vmul.f32 %v267_v30, %v2037_v32  ;;  %1751 = vpow2.f32 %v446_v48  ;;  %v2189_v12 = vrot.slane %v528_v25, %v1963_v58  ;;  %v2192_v30 = vpop.eup %1743 }
  0x6d   :  { %v431_v48 = vmul.f32 %v343_v6, %v2037_v32  ;;  %v2221_v25 = vpop.eup %1745  ;;  %1753 = vpow2.f32 %v480_v10  ;;  %v452_v2 = vmul.f32 1.442695, %v414_v28  ;;  %v213_v6 = vrot.slane %v199_v35, %v1963_v58  ;;  %v31_v10 = vld [vmem:[%s2798_s0 + $0x8] sm:$0xff] }
  0x6e   :  { %v430_v27 = vmul.f32 %v339_v31, %v2037_v32  ;;  %v560_v13 = vcombine.high %v2189_v12, %v2189_v12  ;;  %v214_v28 = vcombine.high %v206_v7, %v206_v7  ;;  %v2273_v31 = vrot.slane %v206_v7, %v1963_v58 }
  0x6f   :  { %v215_v33 = vcombine.high %v213_v6, %v213_v6  ;;  %v2283_v47 = vrot.slane %v213_v6, %v1963_v58 }
  0x70   :  { %1313 = vbcast.lane.b32.xlu1 %v1311_v37, 256  ;;  %1306 = vbcast.lane.b32.xlu0 %v1304_v38, 256  ;;  %v1015_v37 = vrot.slane %v2164_v17, %v1850_v4  ;;  %v448_v38 = vmul.f32 1.442695, %v412_v34  ;;  %v2228_v34 = vrot.slane %v656_v16, %v1850_v4  ;;  %v279_v16 = vrot.slane %v100_v24, %v1850_v4 }
  0x71   :  { %v108_v24 = vrot.slane %v31_v10, %v1963_v58  ;;  %v2270_v22 = vrot.slane %v560_v13, %v1850_v4  ;;  %v2291_v13 = vrot.slane %v214_v28, %v1963_v58  ;;  %v244_v23 = vcombine.high %v2273_v31, %v2273_v31 }
  0x72   :  { %1755 = vpow2.f32 %v448_v38  ;;  %v2248_v38 = vrot.slane %v558_v44, %v1850_v4  ;;  %v2261_v44 = vrot.slane %v2230_v50, %v1963_v58  ;;  %v347_v57 = vrot.slane %v2273_v31, %v1850_v4 }
  0x73   :  { %1757 = vpow2.f32 %v482_v43 }
  0x74   :  { %1585 = vbcast.lane.b32.xlu1 %v1583_v39, 256  ;;  %1578 = vbcast.lane.b32.xlu0 %v1576_v40, 256  ;;  %v484_v39 = vmul.f32 1.442695, %v430_v27  ;;  %v450_v40 = vmul.f32 1.442695, %v413_v15  ;;  %v2239_v27 = vpop.eup %1747  ;;  %v2300_v6 = vrot.slane %v2261_v44, %v1963_v58  ;;  %v674_v46 = vcombine.high %v2261_v44, %v2261_v44 }
  0x75   :  { %v486_v15 = vmul.f32 1.442695, %v431_v48  ;;  %v2257_v35 = vpop.eup %1749  ;;  %v101_v48 = vcombine.high %v31_v10, %v31_v10 }
  0x76   :  { %1759 = vpow2.f32 %v484_v39  ;;  %v2264_v39 = vpop.eup %1751  ;;  %v2384_v26 = vrot.slane %v674_v46, %v1963_v58 }
  0x77   :  { %1761 = vpow2.f32 %v450_v40  ;;  %v415_v40 = vmul.f32 %v279_v16, %v2037_v32  ;;  %v2306_v16 = vpop.eup %1753 }
  0x78   :  { %1347 = vbcast.lane.b32.xlu1 %v1345_v41, 256  ;;  %1340 = vbcast.lane.b32.xlu0 %v1338_v42, 256  ;;  %v35_v41 = vld [vmem:[%s2799_s1 + $0x8] sm:$0xff]  ;;  %1763 = vpow2.f32 %v452_v2 }
  0x79   :  { %1765 = vpow2.f32 %v486_v15  ;;  %v116_v15 = vcombine.high %v108_v24, %v108_v24  ;;  %v454_v51 = vmul.f32 1.442695, %v415_v40 }
  0x7a   :  { %v721_v42 = vpop.permute.xlu1 %720  ;;  %v714_v43 = vpop.permute.xlu0 %713 }
  0x7b   :  { %v1092_v20 = vmul.f32 %v935_v3, %v714_v43  ;;  %v2285_v3 = vmul.f32 %v35_v41, %v31_v10  ;;  %v115_v10 = vrot.slane %v101_v48, %v1963_v58  ;;  %v1093_v28 = vmul.f32 %v939_v62, %v721_v42 }
  0x7c   :  { %1619 = vbcast.lane.b32.xlu1 %v1617_v55, 256  ;;  %1612 = vbcast.lane.b32.xlu0 %v1610_v56, 256  ;;  %v2294_v55 = vrot.slane %v215_v33, %v1963_v58  ;;  %v2318_v48 = vpop.eup %1755  ;;  %v246_v62 = vcombine.high %v2291_v13, %v2291_v13  ;;  %1767 = vpow2.f32 %v454_v51 }
  0x7d   :  { %v2288_v2 = vadd.f32 %v2169_v52, %v1092_v20  ;;  %v2304_v52 = vrot.slane %v108_v24, %v1963_v58  ;;  %v117_v45 = vcombine.high %v115_v10, %v115_v10  ;;  %v2344_v40 = vrot.slane %v115_v10, %v1963_v58 }
  0x7e   :  { %v833_v56 = vpop.permute.xlu1 %832  ;;  %v826_v7 = vpop.permute.xlu0 %825 }
  0x7f   :  { %v1161_v33 = vmul.f32 %v2161_v49, %v2288_v2  ;;  %v1108_v41 = vmul.f32 %v999_v59, %v826_v7  ;;  %v568_v59 = vrot.slane %v2285_v3, %v1963_v58  ;;  %v2347_v7 = vrot.slane %v116_v15, %v1963_v58 }
  0x80   :  { %1381 = vbcast.lane.b32.xlu1 %v1379_v60, 256  ;;  %1374 = vbcast.lane.b32.xlu0 %v1372_v29, 256  ;;  %v2339_v60 = vpop.eup %1757  ;;  %v1109_v44 = vmul.f32 %v1003_v21, %v833_v56  ;;  %v146_v0 = vcombine.high %v2304_v52, %v2304_v52  ;;  %v147_v15 = vcombine.high %v2344_v40, %v2344_v40 }
  0x81   :  { %v2333_v49 = vadd.f32 %v2184_v5, %v1108_v41  ;;  %v2335_v42 = vadd.f32 %v1161_v33, %v1093_v28  ;;  %v283_v5 = vrot.slane %v2304_v52, %v1850_v4  ;;  %v2351_v28 = vpop.eup %1759  ;;  %v2370_v21 = vrot.slane %v568_v59, %v1963_v58 }
  0x82   :  { %v840_v29 = vpop.permute.xlu1 %839  ;;  %v728_v24 = vpop.permute.xlu0 %727  ;;  %v148_v52 = vcombine.high %v2347_v7, %v2347_v7 }
  0x83   :  { %v1162_v33 = vmul.f32 %v2192_v30, %v2333_v49  ;;  %v1094_v41 = vmul.f32 %v2112_v36, %v728_v24  ;;  %v1195_v10 = vmul.f32 %v2239_v27, %v2335_v42  ;;  %v1762_v20 = vpop.eup %1761  ;;  %v704_v36 = vcombine.high %v2300_v6, %v2300_v6 }
  0x84   :  { %1653 = vbcast.lane.b32.xlu1 %v1651_v61, 256  ;;  %1646 = vbcast.lane.b32.xlu0 %v1644_v63, 256  ;;  %v2374_v30 = vpop.eup %1763  ;;  %v2381_v61 = vrot.slane %v117_v45, %v1963_v58  ;;  %v416_v51 = vmul.f32 %v283_v5, %v2037_v32  ;;  %v287_v24 = vrot.slane %v2347_v7, %v1850_v4 }
  0x85   :  { %v2376_v27 = vadd.f32 %v1162_v33, %v1109_v44  ;;  %v2378_v53 = vadd.f32 %v1195_v10, %v1094_v41  ;;  %v2386_v54 = vpop.eup %1765  ;;  %v1110_v45 = vmul.f32 %v2108_v19, %v840_v29  ;;  %v576_v10 = vcombine.high %v568_v59, %v568_v59 }
  0x86   :  { %v847_v63 = vpop.permute.xlu1 %846  ;;  %v735_v56 = vpop.permute.xlu0 %734  ;;  %v2404_v43 = vrot.slane %v704_v36, %v1850_v4  ;;  %v351_v7 = vrot.slane %v2291_v13, %v1850_v4  ;;  %v606_v59 = vcombine.high %v2370_v21, %v2370_v21  ;;  %v417_v36 = vmul.f32 %v287_v24, %v2037_v32 }
  0x87   :  { %v1196_v46 = vmul.f32 %v2221_v25, %v2376_v27  ;;  %v1095_v44 = vmul.f32 %v2156_v14, %v735_v56  ;;  %v1229_v33 = vmul.f32 %v2264_v39, %v2378_v53  ;;  %v1035_v14 = vrot.slane %v2384_v26, %v1850_v4 }
  0x88   :  { %v432_v25 = vmul.f32 %v347_v57, %v2037_v32  ;;  %v456_v56 = vmul.f32 1.442695, %v416_v51  ;;  %v291_v41 = vrot.slane %v146_v0, %v1850_v4  ;;  %v433_v0 = vmul.f32 %v351_v7, %v2037_v32 }
  0x89   :  { %v2408_v5 = vadd.f32 %v1196_v46, %v1110_v45  ;;  %v2410_v19 = vadd.f32 %v1229_v33, %v1095_v44  ;;  %v1111_v45 = vmul.f32 %v2142_v8, %v847_v63  ;;  %v2428_v33 = vrot.slane %v576_v10, %v1963_v58  ;;  %v1768_v63 = vpop.eup %1767 }
  0x8a   :  { %v854_v39 = vpop.permute.xlu1 %853  ;;  %v742_v29 = vpop.permute.xlu0 %741  ;;  %v355_v8 = vrot.slane %v244_v23, %v1850_v4  ;;  %1769 = vpow2.f32 %v456_v56  ;;  %v418_v7 = vmul.f32 %v291_v41, %v2037_v32  ;;  %v295_v51 = vrot.slane %v148_v52, %v1850_v4 }
  0x8b   :  { %v1230_v46 = vmul.f32 %v2257_v35, %v2408_v5  ;;  %v1096_v44 = vmul.f32 %v951_v11, %v742_v29  ;;  %v1263_v57 = vmul.f32 %v2318_v48, %v2410_v19  ;;  %v659_v11 = vcombine.high %v2230_v50, %v2230_v50 }
  0x8c   :  { %v488_v48 = vmul.f32 1.442695, %v432_v25  ;;  %v458_v29 = vmul.f32 1.442695, %v417_v36  ;;  %v1112_v31 = vmul.f32 %v1015_v37, %v854_v39  ;;  %v2803_v50 = vrot.slane %v2189_v12, %v1850_v4 }
  0x8d   :  { %v2437_v35 = vadd.f32 %v1230_v46, %v1111_v45  ;;  %v2439_v1 = vadd.f32 %v1263_v57, %v1096_v44  ;;  %v2455_v56 = vrot.slane %v606_v59, %v1850_v4  ;;  %v561_v41 = vcombine.high %v2285_v3, %v2285_v3 }
  0x8e   :  { %v861_v24 = vpop.permute.xlu1 %860  ;;  %v749_v10 = vpop.permute.xlu0 %748  ;;  %v490_v52 = vmul.f32 1.442695, %v433_v0  ;;  %v434_v36 = vmul.f32 %v355_v8, %v2037_v32  ;;  %1771 = vpow2.f32 %v488_v48  ;;  %v359_v12 = vrot.slane %v246_v62, %v1850_v4 }
  0x8f   :  { %v1264_v23 = vmul.f32 %v2306_v16, %v2437_v35  ;;  %v1097_v25 = vmul.f32 %v2803_v50, %v749_v10  ;;  %v1297_v45 = vmul.f32 %v1762_v20, %v2439_v1  ;;  %1773 = vpow2.f32 %v458_v29 }
  0x90   :  { %v460_v39 = vmul.f32 1.442695, %v418_v7  ;;  %v419_v59 = vmul.f32 %v295_v51, %v2037_v32  ;;  %v299_v3 = vrot.slane %v2344_v40, %v1850_v4  ;;  %v2804_v46 = vrot.slane %v2175_v9, %v1850_v4 }
  0x91   :  { %v2460_v17 = vadd.f32 %v1264_v23, %v1112_v31  ;;  %v2462_v37 = vadd.f32 %v1297_v45, %v1097_v25  ;;  %v971_v62 = vrot.slane %v2428_v33, %v1850_v4  ;;  %1775 = vpow2.f32 %v490_v52 }
  0x92   :  { %v868_v16 = vpop.permute.xlu1 %867  ;;  %v756_v20 = vpop.permute.xlu0 %755  ;;  %v1113_v44 = vmul.f32 %v2804_v46, %v861_v24  ;;  %v492_v51 = vmul.f32 1.442695, %v434_v36  ;;  %v363_v8 = vrot.slane %v2283_v47, %v1850_v4  ;;  %v435_v24 = vmul.f32 %v359_v12, %v2037_v32 }
  0x93   :  { %v1298_v57 = vmul.f32 %v2339_v60, %v2460_v17  ;;  %v1098_v0 = vmul.f32 %v2248_v38, %v756_v20  ;;  %v1331_v13 = vmul.f32 %v2374_v30, %v2462_v37  ;;  %v303_v38 = vrot.slane %v2381_v61, %v1850_v4 }
  0x94   :  { %v608_v30 = vcombine.high %v2428_v33, %v2428_v33  ;;  %1777 = vpow2.f32 %v460_v39  ;;  %v462_v29 = vmul.f32 1.442695, %v419_v59  ;;  %v420_v7 = vmul.f32 %v299_v3, %v2037_v32  ;;  %v1770_v45 = vpop.eup %1769 }
  0x95   :  { %v2483_v48 = vadd.f32 %v1298_v57, %v1113_v44  ;;  %v2485_v9 = vadd.f32 %v1331_v13, %v1098_v0  ;;  %v1114_v31 = vmul.f32 %v2228_v34, %v868_v16  ;;  %v2499_v52 = vrot.slane %v659_v11, %v1963_v58 }
  0x96   :  { %v875_v60 = vpop.permute.xlu1 %874  ;;  %v763_v10 = vpop.permute.xlu0 %762  ;;  %1779 = vpow2.f32 %v492_v51  ;;  %v436_v33 = vmul.f32 %v363_v8, %v2037_v32  ;;  %v367_v36 = vrot.slane %v2294_v55, %v1850_v4  ;;  %v494_v16 = vmul.f32 1.442695, %v435_v24 }
  0x97   :  { %v1332_v23 = vmul.f32 %v2351_v28, %v2483_v48  ;;  %v1099_v50 = vmul.f32 %v2270_v22, %v763_v10  ;;  %v1365_v25 = vmul.f32 %v1768_v63, %v2485_v9  ;;  %v421_v28 = vmul.f32 %v303_v38, %v2037_v32 }
  0x98   :  { %1781 = vpow2.f32 %v462_v29  ;;  %v464_v63 = vmul.f32 1.442695, %v420_v7  ;;  %v307_v11 = vrot.slane %v147_v15, %v1850_v4  ;;  %v149_v39 = vcombine.high %v2381_v61, %v2381_v61  ;;  %v1772_v59 = vpop.eup %1771 }
  0x99   :  { %v2504_v12 = vadd.f32 %v1332_v23, %v1114_v31  ;;  %v2506_v34 = vadd.f32 %v1365_v25, %v1099_v50  ;;  %v1115_v3 = vmul.f32 %v2252_v18, %v875_v60  ;;  %v2805_v44 = vrot.slane %v2370_v21, %v1850_v4  ;;  %v1774_v13 = vpop.eup %1773 }
  0x9a   :  { %v882_v22 = vpop.permute.xlu1 %881  ;;  %v770_v20 = vpop.permute.xlu0 %769  ;;  %v575_v51 = vrot.slane %v561_v41, %v1963_v58  ;;  %v496_v40 = vmul.f32 1.442695, %v436_v33  ;;  %v437_v15 = vmul.f32 %v367_v36, %v2037_v32  ;;  %v2806_v61 = vcombine.high %v2283_v47, %v2283_v47 }
  0x9b   :  { %v1366_v46 = vmul.f32 %v2386_v54, %v2504_v12  ;;  %v1100_v57 = vmul.f32 %v2805_v44, %v770_v20  ;;  %v1399_v0 = vmul.f32 %v1770_v45, %v2506_v34  ;;  %1783 = vpow2.f32 %v494_v16  ;;  %v1776_v24 = vpop.eup %1775 }
  0x9c   :  { %v371_v18 = vrot.slane %v2806_v61, %v1850_v4  ;;  %v247_v21 = vcombine.high %v2294_v55, %v2294_v55  ;;  %1785 = vpow2.f32 %v464_v63  ;;  %v466_v41 = vmul.f32 1.442695, %v421_v28 }
  0x9d   :  { %v2528_v8 = vadd.f32 %v1366_v46, %v1115_v3  ;;  %v2530_v54 = vadd.f32 %v1399_v0, %v1100_v57  ;;  %v422_v10 = vmul.f32 %v307_v11, %v2037_v32  ;;  %v311_v29 = vrot.slane %v149_v39, %v1850_v4 }
  0x9e   :  { %v889_v38 = vpop.permute.xlu1 %888  ;;  %v777_v60 = vpop.permute.xlu0 %776  ;;  %v2807_v47 = vrot.slane %v2300_v6, %v1850_v4  ;;  %v979_v55 = vrot.slane %v608_v30, %v1850_v4  ;;  %v2543_v45 = vrot.slane %v575_v51, %v1963_v58  ;;  %v577_v33 = vcombine.high %v575_v51, %v575_v51 }
  0x9f   :  { %v1101_v31 = vmul.f32 %v971_v62, %v777_v60  ;;  %v1400_v23 = vmul.f32 %v1772_v59, %v2528_v8  ;;  %v1433_v50 = vmul.f32 %v1774_v13, %v2530_v54  ;;  %v1778_v25 = vpop.eup %1777  ;;  %v498_v36 = vmul.f32 1.442695, %v437_v15 }
  0xa0   :  { %v1116_v7 = vmul.f32 %v2807_v47, %v882_v22  ;;  %1787 = vpow2.f32 %v496_v40  ;;  %v438_v6 = vmul.f32 %v371_v18, %v2037_v32  ;;  %v1780_v62 = vpop.eup %1779  ;;  %v468_v63 = vmul.f32 1.442695, %v422_v10 }
  0xa1   :  { %v2547_v28 = vadd.f32 %v1433_v50, %v1101_v31  ;;  %1789 = vpow2.f32 %v466_v41  ;;  %v375_v11 = vrot.slane %v247_v21, %v1850_v4  ;;  %v423_v30 = vmul.f32 %v311_v29, %v2037_v32 }
  0xa2   :  { %v2545_v16 = vadd.f32 %v1400_v23, %v1116_v7  ;;  %v896_v22 = vpop.permute.xlu1 %895  ;;  %v784_v20 = vpop.permute.xlu0 %783  ;;  %v1117_v39 = vmul.f32 %v1035_v14, %v889_v38  ;;  %v2808_v57 = vcombine.high %v2384_v26, %v2384_v26  ;;  %v689_v13 = vrot.slane %v2499_v52, %v1963_v58 }
  0xa3   :  { %v1102_v59 = vmul.f32 %v2455_v56, %v784_v20  ;;  %v1467_v46 = vmul.f32 %v1778_v25, %v2547_v28  ;;  %v1782_v44 = vpop.eup %1781  ;;  %v983_v51 = vrot.slane %v2543_v45, %v1850_v4  ;;  %v675_v14 = vcombine.high %v2499_v52, %v2499_v52 }
  0xa4   :  { %v1434_v3 = vmul.f32 %v1776_v24, %v2545_v16  ;;  %v1043_v0 = vrot.slane %v2808_v57, %v1850_v4  ;;  %1791 = vpow2.f32 %v498_v36  ;;  %v500_v15 = vmul.f32 1.442695, %v438_v6 }
  0xa5   :  { %v2570_v40 = vadd.f32 %v1467_v46, %v1102_v59  ;;  %v2573_v26 = vrot.slane %v577_v33, %v1963_v58  ;;  %1793 = vpow2.f32 %v468_v63  ;;  %v439_v21 = vmul.f32 %v375_v11, %v2037_v32  ;;  %v1784_v38 = vpop.eup %1783 }
  0xa6   :  { %v2568_v56 = vadd.f32 %v1434_v3, %v1117_v39  ;;  %v903_v61 = vpop.permute.xlu1 %902  ;;  %v791_v18 = vpop.permute.xlu0 %790  ;;  %v470_v24 = vmul.f32 1.442695, %v423_v30  ;;  %v1118_v60 = vmul.f32 %v2404_v43, %v896_v22  ;;  %v1047_v47 = vrot.slane %v689_v13, %v1850_v4 }
  0xa7   :  { %v1103_v41 = vmul.f32 %v979_v55, %v791_v18  ;;  %v1501_v10 = vmul.f32 %v1782_v44, %v2570_v40  ;;  %v1786_v29 = vpop.eup %1785  ;;  %v2581_v7 = vrot.slane %v675_v14, %v1963_v58  ;;  %1795 = vpow2.f32 %v500_v15 }
  0xa8   :  { %v1468_v52 = vmul.f32 %v1780_v62, %v2568_v56  ;;  %v987_v43 = vrot.slane %v2573_v26, %v1850_v4  ;;  %v607_v25 = vcombine.high %v2543_v45, %v2543_v45  ;;  %v502_v55 = vmul.f32 1.442695, %v439_v21 }
  0xa9   :  { %v2585_v23 = vadd.f32 %v1501_v10, %v1103_v41  ;;  %1797 = vpow2.f32 %v470_v24  ;;  %v1119_v36 = vmul.f32 %v1043_v0, %v903_v61  ;;  %v1051_v30 = vrot.slane %v2581_v7, %v1850_v4 }
  0xaa   :  { %v2583_v31 = vadd.f32 %v1468_v52, %v1118_v60  ;;  %v910_v32 = vpop.permute.xlu1 %909  ;;  %v798_v50 = vpop.permute.xlu0 %797  ;;  %v705_v45 = vcombine.high %v689_v13, %v689_v13  ;;  %v991_v59 = vrot.slane %v607_v25, %v1850_v4  ;;  %1799 = vpow2.f32 %v502_v55 }
  0xab   :  { %v1788_v33 = vpop.eup %1787  ;;  %v1104_v6 = vmul.f32 %v983_v51, %v798_v50  ;;  %v1535_v62 = vmul.f32 %v1786_v29, %v2585_v23  ;;  %v1120_v46 = vmul.f32 %v1047_v47, %v910_v32 }
  0xac   :  { %v1502_v58 = vmul.f32 %v1784_v38, %v2583_v31  ;;  %v1790_v22 = vpop.eup %1789  ;;  %v1055_v18 = vrot.slane %v705_v45, %v1850_v4 }
  0xad   :  { %v2595_v63 = vadd.f32 %v1535_v62, %v1104_v6 }
  0xae   :  { %v2593_v20 = vadd.f32 %v1502_v58, %v1119_v36  ;;  %v917_v11 = vpop.permute.xlu1 %916  ;;  %v805_v39 = vpop.permute.xlu0 %804 }
  0xaf   :  { %v1792_v3 = vpop.eup %1791  ;;  %v1105_v44 = vmul.f32 %v987_v43, %v805_v39  ;;  %v1569_v0 = vmul.f32 %v1790_v22, %v2595_v63  ;;  %v1121_v24 = vmul.f32 %v1051_v30, %v917_v11 }
  0xb0   :  { %v1536_v57 = vmul.f32 %v1788_v33, %v2593_v20  ;;  %v1794_v51 = vpop.eup %1793 }
  0xb1   :  { %v2604_v15 = vadd.f32 %v1569_v0, %v1105_v44  ;;  %v1796_v13 = vpop.eup %1795 }
  0xb2   :  { %v2602_v14 = vadd.f32 %v1536_v57, %v1120_v46  ;;  %v924_v61 = vpop.permute.xlu1 %923  ;;  %v812_v21 = vpop.permute.xlu0 %811 }
  0xb3   :  { %v1106_v38 = vmul.f32 %v991_v59, %v812_v21  ;;  %v1603_v41 = vmul.f32 %v1794_v51, %v2604_v15  ;;  %v1798_v52 = vpop.eup %1797  ;;  %v1122_v47 = vmul.f32 %v1055_v18, %v924_v61 }
  0xb4   :  { %v1570_v60 = vmul.f32 %v1792_v3, %v2602_v14  ;;  %v1800_v36 = vpop.eup %1799 }
  0xb5   :  { %v2611_v29 = vadd.f32 %v1603_v41, %v1106_v38 }
  0xb6   :  { %v2609_v10 = vadd.f32 %v1570_v60, %v1121_v24  ;;  %v1143_v32 = vpop.permute.xlu1 %1142  ;;  %v1136_v50 = vpop.permute.xlu0 %1135 }
  0xb7   :  { %v1145_v43 = vmul.f32 %v1143_v32, %v2333_v49  ;;  %v1144_v25 = vmul.f32 %v1136_v50, %v2288_v2  ;;  %v2617_v33 = vmul.f32 %v1798_v52, %v2611_v29 }
  0xb8   :  { %v1604_v55 = vmul.f32 %v1796_v13, %v2609_v10 }
  0xb9   :  { %v1154_v6 = vsel %vm27_vm0, %v1145_v43, 0.0  ;;  %v1147_v58 = vsel %vm27_vm0, %v1144_v25, 0.0 }
  0xba   :  { %v2621_v62 = vadd.f32 %v1604_v55, %v1122_v47  ;;  %v1155_v22 = vrot.slane %v1154_v6, 4  ;;  %v1148_v11 = vrot.slane %v1147_v58, 4  ;;  %v1178_v30 = vpop.permute.xlu1 %1177  ;;  %v1171_v39 = vpop.permute.xlu0 %1170 }
  0xbb   :  { %v1180_v49 = vmul.f32 %v1178_v30, %v2376_v27  ;;  %v1179_v2 = vmul.f32 %v1171_v39, %v2335_v42  ;;  %v609_v30 = vcombine.high %v2573_v26, %v2573_v26 }
  0xbc   :  { %v2626_v45 = vmul.f32 %v1800_v36, %v2621_v62  ;;  %v1156_v59 = vadd.f32 %v1155_v22, %v1154_v6  ;;  %v1149_v3 = vadd.f32 %v1148_v11, %v1147_v58  ;;  %v707_v11 = vcombine.high %v2581_v7, %v2581_v7 }
  0xbd   :  { %v1188_v46 = vsel %vm27_vm0, %v1180_v49, 0.0  ;;  %v1181_v44 = vsel %vm27_vm0, %v1179_v2, 0.0 }
  0xbe   :  { %v1157_v57 = vrot.slane %v1156_v59, 2  ;;  %v1150_v0 = vrot.slane %v1149_v3, 2  ;;  %v1189_v51 = vrot.slane %v1188_v46, 4  ;;  %v1182_v61 = vrot.slane %v1181_v44, 4  ;;  %v1416_v18 = vpop.permute.xlu1 %1415  ;;  %v1409_v21 = vpop.permute.xlu0 %1408 }
  0xbf   :  { %v1418_v13 = vmul.f32 %v1416_v18, %v2545_v16  ;;  %v1417_v27 = vmul.f32 %v1409_v21, %v2530_v54 }
  0xc0   :  { %v1158_v42 = vadd.f32 %v1157_v57, %v1156_v59  ;;  %v1151_v24 = vadd.f32 %v1150_v0, %v1149_v3  ;;  %v1190_v38 = vadd.f32 %v1189_v51, %v1188_v46  ;;  %v1183_v60 = vadd.f32 %v1182_v61, %v1181_v44 }
  0xc1   :  { %v1426_v50 = vsel %vm27_vm0, %v1418_v13, 0.0  ;;  %v1419_v43 = vsel %vm27_vm0, %v1417_v27, 0.0 }
  0xc2   :  { %v1191_v41 = vrot.slane %v1190_v38, 2  ;;  %v1184_v52 = vrot.slane %v1183_v60, 2  ;;  %v1450_v47 = vpop.permute.xlu1 %1449  ;;  %v1443_v32 = vpop.permute.xlu0 %1442  ;;  %v1159_v16 = vrot.slane %v1158_v42, 1  ;;  %v1152_v36 = vrot.slane %v1151_v24, 1 }
  0xc3   :  { %v1452_v25 = vmul.f32 %v1450_v47, %v2568_v56  ;;  %v1451_v55 = vmul.f32 %v1443_v32, %v2547_v28  ;;  %v1427_v3 = vrot.slane %v1426_v50, 4  ;;  %v1420_v46 = vrot.slane %v1419_v43, 4 }
  0xc4   :  { %v1192_v54 = vadd.f32 %v1191_v41, %v1190_v38  ;;  %v1185_v6 = vadd.f32 %v1184_v52, %v1183_v60  ;;  %v1160_v0 = vadd.f32 %v1159_v16, %v1158_v42  ;;  %v1153_v51 = vadd.f32 %v1152_v36, %v1151_v24 }
  0xc5   :  { %v1460_v58 = vsel %vm27_vm0, %v1452_v25, 0.0  ;;  %v1453_v22 = vsel %vm27_vm0, %v1451_v55, 0.0  ;;  %v1059_v42 = vrot.slane %v707_v11, %v1850_v4  ;;  %v995_v24 = vrot.slane %v609_v30, %v1850_v4 }
  0xc6   :  { %v1193_v39 = vrot.slane %v1192_v54, 1  ;;  %v1186_v49 = vrot.slane %v1185_v6, 1  ;;  %v1461_v2 = vrot.slane %v1460_v58, 4  ;;  %v1454_v56 = vrot.slane %v1453_v22, 4  ;;  %v1212_v59 = vpop.permute.xlu1 %1211  ;;  %v1205_v28 = vpop.permute.xlu0 %1204 }
  0xc7   :  { %v1214_v44 = vmul.f32 %v1212_v59, %v2408_v5  ;;  %v1213_v57 = vmul.f32 %v1205_v28, %v2378_v53  ;;  %v1428_v52 = vadd.f32 %v1427_v3, %v1426_v50  ;;  %v1421_v47 = vadd.f32 %v1420_v46, %v1419_v43 }
  0xc8   :  { %v1194_v61 = vadd.f32 %v1193_v39, %v1192_v54  ;;  %v1187_v18 = vadd.f32 %v1186_v49, %v1185_v6  ;;  %v1462_v27 = vadd.f32 %v1461_v2, %v1460_v58  ;;  %v1455_v38 = vadd.f32 %v1454_v56, %v1453_v22 }
  0xc9   :  { %v1222_v7 = vsel %vm27_vm0, %v1214_v44, 0.0  ;;  %v1215_v26 = vsel %vm27_vm0, %v1213_v57, 0.0  ;;  %v1429_v50 = vrot.slane %v1428_v52, 2  ;;  %v1422_v43 = vrot.slane %v1421_v47, 2 }
  0xca   :  { %v2647_v21 = vsel %vm1673_vm1, %v1160_v0, %v1194_v61  ;;  %v2650_v13 = vsel %vm1673_vm1, %v1153_v51, %v1187_v18  ;;  %v1484_v60 = vpop.permute.xlu1 %1483  ;;  %v1477_v5 = vpop.permute.xlu0 %1476  ;;  %v1223_v41 = vrot.slane %v1222_v7, 4  ;;  %v1216_v53 = vrot.slane %v1215_v26, 4  ;;  %v2667_v0 = vld [vmem:[%s2801_s5] ss:$0 sm:$0xff] }
  0xcb   :  { %v1486_v32 = vmul.f32 %v1484_v60, %v2583_v31  ;;  %v1485_v25 = vmul.f32 %v1477_v5, %v2570_v40  ;;  %v1463_v36 = vrot.slane %v1462_v27, 2  ;;  %v1456_v54 = vrot.slane %v1455_v38, 2 }
  0xcc   :  { %v1224_v55 = vadd.f32 %v1223_v41, %v1222_v7  ;;  %v1217_v16 = vadd.f32 %v1216_v53, %v1215_v26  ;;  %v2669_v26 = vadd.f32 %v1429_v50, %v1428_v52  ;;  %v2671_v60 = vadd.f32 %v1422_v43, %v1421_v47  ;;  %v1801_v53 = vld [vmem:[%s2799_s1] sm:$0xff] }
  0xcd   :  { %v1494_v6 = vsel %vm27_vm0, %v1486_v32, 0.0  ;;  %v1487_v58 = vsel %vm27_vm0, %v1485_v25, 0.0  ;;  %v1464_v51 = vadd.f32 %v1463_v36, %v1462_v27  ;;  %v1457_v61 = vadd.f32 %v1456_v54, %v1455_v38 }
  0xce   :  { %v931_v22 = vpop.permute.xlu1 %930  ;;  %v819_v39 = vpop.permute.xlu0 %818  ;;  %v1225_v49 = vrot.slane %v1224_v55, 2  ;;  %v1218_v11 = vrot.slane %v1217_v16, 2  ;;  %v1495_v2 = vrot.slane %v1494_v6, 4  ;;  %v1488_v4 = vrot.slane %v1487_v58, 4 }
  0xcf   :  { %v1123_v30 = vmul.f32 %v1059_v42, %v931_v22  ;;  %v1107_v31 = vmul.f32 %v995_v24, %v819_v39  ;;  %v2683_v42 = vmul.f32 %v1801_v53, %v2667_v0  ;;  %v1465_v47 = vrot.slane %v1464_v51, 1 }
  0xd0   :  { %v1226_v56 = vadd.f32 %v1225_v49, %v1224_v55  ;;  %v1219_v40 = vadd.f32 %v1218_v11, %v1217_v16  ;;  %v1496_v59 = vadd.f32 %v1495_v2, %v1494_v6  ;;  %v1489_v28 = vadd.f32 %v1488_v4, %v1487_v58 }
  0xd1   :  { %v2659_v44 = vadd.f32 %v2626_v45, %v1123_v30  ;;  %v2662_v57 = vadd.f32 %v2617_v33, %v1107_v31  ;;  %v1458_v32 = vrot.slane %v1457_v61, 1  ;;  %v1431_v58 = vrot.slane %v2669_v26, 1 }
  0xd2   :  { %v1246_v3 = vpop.permute.xlu1 %1245  ;;  %v1239_v46 = vpop.permute.xlu0 %1238  ;;  %v1227_v18 = vrot.slane %v1226_v56, 1  ;;  %v1220_v7 = vrot.slane %v1219_v40, 1  ;;  %v1497_v27 = vrot.slane %v1496_v59, 2  ;;  %v1490_v38 = vrot.slane %v1489_v28, 2 }
  0xd3   :  { %v1248_v5 = vmul.f32 %v1246_v3, %v2437_v35  ;;  %v1247_v45 = vmul.f32 %v1239_v46, %v2410_v19  ;;  %1672 = vst.msk [vmem:[#allocation2 + $0x4] sm:$0xf] %vm27_vm0, %v2659_v44  ;;  %1671 = vst.msk [vmem:[#allocation2] sm:$0xf] %vm27_vm0, %v2662_v57  ;;  %v1424_v22 = vrot.slane %v2671_v60, 1  ;;  %v1466_v43 = vadd.f32 %v1465_v47, %v1464_v51 }
  0xd4   :  { %v1228_v33 = vadd.f32 %v1227_v18, %v1226_v56  ;;  %v1221_v41 = vadd.f32 %v1220_v7, %v1219_v40  ;;  %v1498_v39 = vadd.f32 %v1497_v27, %v1496_v59  ;;  %v1491_v49 = vadd.f32 %v1490_v38, %v1489_v28 }
  0xd5   :  { %v1256_v35 = vsel %vm27_vm0, %v1248_v5, 0.0  ;;  %v1249_v19 = vsel %vm27_vm0, %v1247_v45, 0.0  ;;  %v1459_v30 = vadd.f32 %v1458_v32, %v1457_v61 }
  0xd6   :  { %v1518_v24 = vpop.permute.xlu1 %1517  ;;  %v1511_v52 = vpop.permute.xlu0 %1510  ;;  %v2689_v25 = vsel %vm1676_vm2, %v2647_v21, %v1228_v33  ;;  %v2693_v55 = vsel %vm1676_vm2, %v2650_v13, %v1221_v41  ;;  %v1257_v16 = vrot.slane %v1256_v35, 4  ;;  %v1250_v36 = vrot.slane %v1249_v19, 4 }
  0xd7   :  { %v1520_v54 = vmul.f32 %v1518_v24, %v2593_v20  ;;  %v1519_v6 = vmul.f32 %v1511_v52, %v2585_v23  ;;  %v1499_v59 = vrot.slane %v1498_v39, 1  ;;  %v1492_v28 = vrot.slane %v1491_v49, 1 }
  0xd8   :  { %v1258_v11 = vadd.f32 %v1257_v16, %v1256_v35  ;;  %v1251_v2 = vadd.f32 %v1250_v36, %v1249_v19  ;;  %v1432_v16 = vadd.f32 %v1431_v58, %v2669_v26  ;;  %v1425_v36 = vadd.f32 %v1424_v22, %v2671_v60 }
  0xd9   :  { %v1528_v21 = vsel %vm27_vm0, %v1520_v54, 0.0  ;;  %v1521_v4 = vsel %vm27_vm0, %v1519_v6, 0.0 }
  0xda   :  { %v1280_v13 = vpop.permute.xlu1 %1279  ;;  %v1273_v50 = vpop.permute.xlu0 %1272  ;;  %v1529_v31 = vrot.slane %v1528_v21, 4  ;;  %v1522_v20 = vrot.slane %v1521_v4, 4  ;;  %v1259_v56 = vrot.slane %v1258_v11, 2  ;;  %v1252_v23 = vrot.slane %v1251_v2, 2 }
  0xdb   :  { %v1282_v40 = vmul.f32 %v1280_v13, %v2460_v17  ;;  %v1281_v3 = vmul.f32 %v1273_v50, %v2439_v1  ;;  %v1694_v50 = vsel %vm1673_vm1, %v1425_v36, %v1459_v30 }
  0xdc   :  { %v1530_v46 = vadd.f32 %v1529_v31, %v1528_v21  ;;  %v1523_v18 = vadd.f32 %v1522_v20, %v1521_v4  ;;  %v1260_v7 = vadd.f32 %v1259_v56, %v1258_v11  ;;  %v1253_v5 = vadd.f32 %v1252_v23, %v1251_v2 }
  0xdd   :  { %v1290_v45 = vsel %vm27_vm0, %v1282_v40, 0.0  ;;  %v1283_v51 = vsel %vm27_vm0, %v1281_v3, 0.0  ;;  %v1500_v21 = vadd.f32 %v1499_v59, %v1498_v39  ;;  %v1493_v4 = vadd.f32 %v1492_v28, %v1491_v49 }
  0xde   :  { %v1552_v61 = vpop.permute.xlu1 %1551  ;;  %v1545_v33 = vpop.permute.xlu0 %1544  ;;  %v1531_v41 = vrot.slane %v1530_v46, 2  ;;  %v1524_v27 = vrot.slane %v1523_v18, 2  ;;  %v1291_v38 = vrot.slane %v1290_v45, 4  ;;  %v1284_v53 = vrot.slane %v1283_v51, 4 }
  0xdf   :  { %v1261_v17 = vrot.slane %v1260_v7, 1  ;;  %v1254_v35 = vrot.slane %v1253_v5, 1  ;;  %v1554_v1 = vmul.f32 %v1552_v61, %v2602_v14  ;;  %v1553_v19 = vmul.f32 %v1545_v33, %v2595_v63 }
  0xe0   :  { %v1532_v24 = vadd.f32 %v1531_v41, %v1530_v46  ;;  %v1525_v52 = vadd.f32 %v1524_v27, %v1523_v18  ;;  %v1292_v47 = vadd.f32 %v1291_v38, %v1290_v45  ;;  %v1285_v32 = vadd.f32 %v1284_v53, %v1283_v51 }
  0xe1   :  { %v1562_v54 = vsel %vm27_vm0, %v1554_v1, 0.0  ;;  %v1555_v6 = vsel %vm27_vm0, %v1553_v19, 0.0  ;;  %v1695_v63 = vsel %vm1673_vm1, %v1432_v16, %v1466_v43  ;;  %v1262_v56 = vadd.f32 %v1261_v17, %v1260_v7 }
  0xe2   :  { %v1314_v11 = vpop.permute.xlu1 %1313  ;;  %v1307_v2 = vpop.permute.xlu0 %1306  ;;  %v1533_v13 = vrot.slane %v1532_v24, 1  ;;  %v1526_v14 = vrot.slane %v1525_v52, 1  ;;  %v1563_v31 = vrot.slane %v1562_v54, 4  ;;  %v1556_v20 = vrot.slane %v1555_v6, 4 }
  0xe3   :  { %v1255_v26 = vadd.f32 %v1254_v35, %v1253_v5  ;;  %v1293_v58 = vrot.slane %v1292_v47, 2  ;;  %v1286_v60 = vrot.slane %v1285_v32, 2  ;;  %v1316_v40 = vmul.f32 %v1314_v11, %v2483_v48 }
  0xe4   :  { %v1564_v22 = vadd.f32 %v1563_v31, %v1562_v54  ;;  %v1557_v23 = vadd.f32 %v1556_v20, %v1555_v6  ;;  %v1315_v3 = vmul.f32 %v1307_v2, %v2462_v37  ;;  %v1697_v59 = vsel %vm1676_vm2, %v1695_v63, %v1500_v21 }
  0xe5   :  { %v1696_v43 = vsel %vm1676_vm2, %v1694_v50, %v1493_v4  ;;  %v1534_v28 = vadd.f32 %v1533_v13, %v1532_v24  ;;  %v1527_v30 = vadd.f32 %v1526_v14, %v1525_v52  ;;  %v1324_v7 = vsel %vm27_vm0, %v1316_v40, 0.0 }
  0xe6   :  { %v1586_v39 = vpop.permute.xlu1 %1585  ;;  %v1579_v49 = vpop.permute.xlu0 %1578  ;;  %v1565_v46 = vrot.slane %v1564_v22, 2  ;;  %v1558_v18 = vrot.slane %v1557_v23, 2  ;;  %v1317_v5 = vsel %vm27_vm0, %v1315_v3, 0.0  ;;  %v1681_v48 = vsel %vm1679_vm3, %v2689_v25, %v1262_v56 }
  0xe7   :  { %v1680_v37 = vsel %vm1679_vm3, %v2693_v55, %v1255_v26  ;;  %v1294_v45 = vadd.f32 %v1293_v58, %v1292_v47  ;;  %v1287_v51 = vadd.f32 %v1286_v60, %v1285_v32  ;;  %v1588_v41 = vmul.f32 %v1586_v39, %v2609_v10 }
  0xe8   :  { %v1566_v61 = vadd.f32 %v1565_v46, %v1564_v22  ;;  %v1559_v33 = vadd.f32 %v1558_v18, %v1557_v23  ;;  %v1587_v27 = vmul.f32 %v1579_v49, %v2604_v15  ;;  %v1699_v17 = vsel %vm1679_vm3, %v1697_v59, %v1534_v28 }
  0xe9   :  { %v1698_v35 = vsel %vm1679_vm3, %v1696_v43, %v1527_v30  ;;  %v1325_v1 = vrot.slane %v1324_v7, 4  ;;  %v1318_v19 = vrot.slane %v1317_v5, 4  ;;  %v1596_v55 = vsel %vm27_vm0, %v1588_v41, 0.0 }
  0xea   :  { %v1348_v38 = vpop.permute.xlu1 %1347  ;;  %v1341_v53 = vpop.permute.xlu0 %1340  ;;  %v1567_v25 = vrot.slane %v1566_v61, 1  ;;  %v1560_v24 = vrot.slane %v1559_v33, 1  ;;  %v1589_v52 = vsel %vm27_vm0, %v1587_v27, 0.0  ;;  %v1295_v47 = vrot.slane %v1294_v45, 1 }
  0xeb   :  { %v1288_v32 = vrot.slane %v1287_v51, 1  ;;  %v1597_v16 = vrot.slane %v1596_v55, 4  ;;  %v1590_v10 = vrot.slane %v1589_v52, 4  ;;  %v1350_v54 = vmul.f32 %v1348_v38, %v2504_v12 }
  0xec   :  { %v1568_v36 = vadd.f32 %v1567_v25, %v1566_v61  ;;  %v1561_v15 = vadd.f32 %v1560_v24, %v1559_v33  ;;  %v1349_v6 = vmul.f32 %v1341_v53, %v2485_v9  ;;  %v1326_v21 = vadd.f32 %v1325_v1, %v1324_v7 }
  0xed   :  { %v1319_v4 = vadd.f32 %v1318_v19, %v1317_v5  ;;  %v1598_v13 = vadd.f32 %v1597_v16, %v1596_v55  ;;  %v1591_v14 = vadd.f32 %v1590_v10, %v1589_v52  ;;  %v1358_v31 = vsel %vm27_vm0, %v1350_v54, 0.0 }
  0xee   :  { %v1620_v11 = vpop.permute.xlu1 %1619  ;;  %v1613_v2 = vpop.permute.xlu0 %1612  ;;  %v1701_v63 = vsel %vm1682_vm4, %v1699_v17, %v1568_v36  ;;  %v1700_v50 = vsel %vm1682_vm4, %v1698_v35, %v1561_v15  ;;  %v1351_v20 = vsel %vm27_vm0, %v1349_v6, 0.0  ;;  %v1296_v56 = vadd.f32 %v1295_v47, %v1294_v45 }
  0xef   :  { %v1289_v26 = vadd.f32 %v1288_v32, %v1287_v51  ;;  %v1599_v12 = vrot.slane %v1598_v13, 2  ;;  %v1592_v58 = vrot.slane %v1591_v14, 2  ;;  %v1359_v9 = vrot.slane %v1358_v31, 4 }
  0xf0   :  { %v1352_v60 = vrot.slane %v1351_v20, 4  ;;  %v1622_v22 = vmul.f32 %v1620_v11, %v2621_v62  ;;  %v1621_v23 = vmul.f32 %v1613_v2, %v2611_v29  ;;  %v1327_v39 = vrot.slane %v1326_v21, 2 }
  0xf1   :  { %v1320_v49 = vrot.slane %v1319_v4, 2  ;;  %v1600_v59 = vadd.f32 %v1599_v12, %v1598_v13  ;;  %v1593_v43 = vadd.f32 %v1592_v58, %v1591_v14  ;;  %v1360_v28 = vadd.f32 %v1359_v9, %v1358_v31 }
  0xf2   :  { %v1382_v40 = vpop.permute.xlu1 %1381  ;;  %v1375_v3 = vpop.permute.xlu0 %1374  ;;  %v1353_v30 = vadd.f32 %v1352_v60, %v1351_v20  ;;  %v1630_v46 = vsel %vm27_vm0, %v1622_v22, 0.0  ;;  %v1623_v18 = vsel %vm27_vm0, %v1621_v23, 0.0  ;;  %v2740_v7 = vsel %vm1682_vm4, %v1681_v48, %v1296_v56 }
  0xf3   :  { %v2743_v5 = vsel %vm1682_vm4, %v1680_v37, %v1289_v26  ;;  %v1601_v62 = vrot.slane %v1600_v59, 1  ;;  %v1594_v29 = vrot.slane %v1593_v43, 1  ;;  %v1361_v45 = vrot.slane %v1360_v28, 2 }
  0xf4   :  { %v1354_v51 = vrot.slane %v1353_v30, 2  ;;  %v1631_v61 = vrot.slane %v1630_v46, 4  ;;  %v1624_v33 = vrot.slane %v1623_v18, 4  ;;  %v1384_v38 = vmul.f32 %v1382_v40, %v2528_v8 }
  0xf5   :  { %v1602_v41 = vadd.f32 %v1601_v62, %v1600_v59  ;;  %v1595_v27 = vadd.f32 %v1594_v29, %v1593_v43  ;;  %v1383_v53 = vmul.f32 %v1375_v3, %v2506_v34  ;;  %v1328_v17 = vadd.f32 %v1327_v39, %v1326_v21  ;;  %v1802_v62 = vld [vmem:[%s2799_s1 + $0x10] sm:$0xff] }
  0xf6   :  { %v1321_v35 = vadd.f32 %v1320_v49, %v1319_v4  ;;  %v1632_v1 = vadd.f32 %v1631_v61, %v1630_v46  ;;  %v1625_v48 = vadd.f32 %v1624_v33, %v1623_v18  ;;  %v1654_v19 = vpop.permute.xlu1 %1653  ;;  %v1647_v25 = vpop.permute.xlu0 %1646  ;;  %v1392_v55 = vsel %vm27_vm0, %v1384_v38, 0.0 }
  0xf7   :  { %v1703_v37 = vsel %vm1685_vm5, %v1701_v63, %v1602_v41  ;;  %v1702_v24 = vsel %vm1685_vm5, %v1700_v50, %v1595_v27  ;;  %v1385_v52 = vsel %vm27_vm0, %v1383_v53, 0.0  ;;  %v1362_v47 = vadd.f32 %v1361_v45, %v1360_v28 }
  0xf8   :  { %v1355_v32 = vadd.f32 %v1354_v51, %v1353_v30  ;;  %v1633_v8 = vrot.slane %v1632_v1, 2  ;;  %v1626_v16 = vrot.slane %v1625_v48, 2  ;;  %v1393_v34 = vrot.slane %v1392_v55, 4 }
  0xf9   :  { %v1386_v10 = vrot.slane %v1385_v52, 4  ;;  %v1656_v36 = vmul.f32 %v1654_v19, %v2659_v44  ;;  %v1655_v15 = vmul.f32 %v1647_v25, %v2662_v57  ;;  %v1329_v54 = vrot.slane %v1328_v17, 1  ;;  %v1804_v19 = vld [vmem:[%s2799_s1 + $0x8] sm:$0xff] }
  0xfa   :  { %v1322_v6 = vrot.slane %v1321_v35, 1  ;;  %v1634_v11 = vadd.f32 %v1633_v8, %v1632_v1  ;;  %v1627_v2 = vadd.f32 %v1626_v16, %v1625_v48  ;;  %v1394_v21 = vadd.f32 %v1393_v34, %v1392_v55 }
  0xfb   :  { %v1387_v4 = vadd.f32 %v1386_v10, %v1385_v52  ;;  %v1664_v13 = vsel %vm27_vm0, %v1656_v36, 0.0  ;;  %v1657_v14 = vsel %vm27_vm0, %v1655_v15, 0.0  ;;  %v1363_v63 = vrot.slane %v1362_v47, 1 }
  0xfc   :  { %v1356_v50 = vrot.slane %v1355_v32, 1  ;;  %v1635_v31 = vrot.slane %v1634_v11, 1  ;;  %v1628_v20 = vrot.slane %v1627_v2, 1  ;;  %v1395_v56 = vrot.slane %v1394_v21, 2 }
  0xfd   :  { %v1388_v26 = vrot.slane %v1387_v4, 2  ;;  %v1665_v12 = vrot.slane %v1664_v13, 4  ;;  %v1658_v44 = vrot.slane %v1657_v14, 4  ;;  %v1330_v58 = vadd.f32 %v1329_v54, %v1328_v17 }
  0xfe   :  { %v1323_v57 = vadd.f32 %v1322_v6, %v1321_v35  ;;  %v1636_v9 = vadd.f32 %v1635_v31, %v1634_v11  ;;  %v1629_v60 = vadd.f32 %v1628_v20, %v1627_v2  ;;  %v1396_v22 = vadd.f32 %v1395_v56, %v1394_v21 }
  0xff   :  { %v1389_v23 = vadd.f32 %v1388_v26, %v1387_v4  ;;  %v1666_v40 = vadd.f32 %v1665_v12, %v1664_v13  ;;  %v1659_v3 = vadd.f32 %v1658_v44, %v1657_v14  ;;  %v1364_v39 = vadd.f32 %v1363_v63, %v1362_v47 }
 0x100   :  { %v1357_v49 = vadd.f32 %v1356_v50, %v1355_v32  ;;  %v1705_v59 = vsel %vm1688_vm6, %v1703_v37, %v1636_v9  ;;  %v1704_v43 = vsel %vm1688_vm6, %v1702_v24, %v1629_v60  ;;  %v1397_v28 = vrot.slane %v1396_v22, 1 }
 0x101   :  { %v1390_v30 = vrot.slane %v1389_v23, 1  ;;  %v1667_v46 = vrot.slane %v1666_v40, 2  ;;  %v1660_v18 = vrot.slane %v1659_v3, 2  ;;  %v1716_v29 = vmul.f32 %v1802_v62, %v2667_v0 }
 0x102   :  { %v1687_v45 = vsel %vm1685_vm5, %v2740_v7, %v1330_v58  ;;  %v1686_v51 = vsel %vm1685_vm5, %v2743_v5, %v1323_v57  ;;  %v1398_v61 = vadd.f32 %v1397_v28, %v1396_v22  ;;  %v1803_v7 = vld [vmem:[%s2799_s1 + $0x18] sm:$0xff]  ;;  %v1715_v25 = vmul.f32 %v1804_v19, %v2667_v0 }
 0x103   :  { %v1391_v33 = vadd.f32 %v1390_v30, %v1389_v23  ;;  %v1668_v41 = vadd.f32 %v1667_v46, %v1666_v40  ;;  %v1661_v27 = vadd.f32 %v1660_v18, %v1659_v3  ;;  %v1690_v38 = vsel %vm1688_vm6, %v1687_v45, %v1364_v39 }
 0x104   :  { %v1689_v53 = vsel %vm1688_vm6, %v1686_v51, %v1357_v49  ;;  %v1693_v17 = vsel %vm1691_vm7, %v1690_v38, %v1398_v61  ;;  %v1717_v5 = vmul.f32 %v1803_v7, %v2667_v0 }
 0x105   :  { %v1692_v35 = vsel %vm1691_vm7, %v1689_v53, %v1391_v33  ;;  %v1669_v1 = vrot.slane %v1668_v41, 1  ;;  %v1662_v48 = vrot.slane %v1661_v27, 1  ;;  %v1720_v37 = vadd.f32 %v1716_v29, %v1693_v17 }
 0x106   :  { %v1718_v24 = vadd.f32 %v2683_v42, %v1692_v35 }
 0x107   :  { %v1670_v55 = vadd.f32 %v1669_v1, %v1668_v41  ;;  %v1663_v52 = vadd.f32 %v1662_v48, %v1661_v27  ;;  %1725 = vst.msk [vmem:[%s2802_s6 + $0x10] sm:$0xff] %vm1722_vm8, %v1720_v37 }
 0x108   :  { %1723 = vst.msk [vmem:[%s2802_s6] sm:$0xff] %vm1722_vm8, %v1718_v24 }
 0x109   :  { %v1707_v47 = vsel %vm1691_vm7, %v1705_v59, %v1670_v55  ;;  %v1706_v32 = vsel %vm1691_vm7, %v1704_v43, %v1663_v52 }
 0x10a   :  { %v1721_v0 = vadd.f32 %v1717_v5, %v1707_v47  ;;  %v1719_v8 = vadd.f32 %v1715_v25, %v1706_v32 }
 0x10c   :  { %1726 = vst.msk [vmem:[%s2802_s6 + $0x18] sm:$0xff] %vm1722_vm8, %v1721_v0  ;;  %1724 = vst.msk [vmem:[%s2802_s6 + $0x8] sm:$0xff] %vm1722_vm8, %v1719_v8 }

</bundles_post_ra>
